<compile_context>
chip_gen: v6e
topology: v6e:2x2x1
jax: 0.10.0
libtpu: 0.0.40
codegen_flags: <defaults>
</compile_context>

<pallas_src>
import functools

import jax
import jax.numpy as jnp
from jax.experimental import pallas as pl
from jax.experimental.pallas import tpu as pltpu


_ACTIVATIONS = {
    "silu": jax.nn.silu,
    "tanh": jnp.tanh,
    "sigmoid": jax.nn.sigmoid,
}

# Single-pass MXU matmuls; accumulation stays f32 via preferred_element_type.
_PREC = jax.lax.Precision.DEFAULT


def _round_up(a, m):
    return ((a + m - 1) // m) * m


def _gated_equivariant_kernel(
    x_ref, v_ref,
    wv_ref, wux_ref, wuv_ref, bu1_ref, wu2_ref, bu2_ref,
    ox_ref, ov_ref,
    *, hidden, out_ch, activation, scalar_activation,
):
    act = _ACTIVATIONS[activation]
    H, O = hidden, out_ch
    dot = functools.partial(jnp.dot, precision=_PREC,
                            preferred_element_type=jnp.float32)

    x = x_ref[...]                       # (tn, H)
    wv = wv_ref[...]                     # (H, H+O) = [vec1_proj.T | vec2_proj.T]

    # Static loop over the 3 Cartesian components: one fused MXU dot each.
    # First H lanes feed the squared-norm accumulator; the last O lanes (vec2)
    # are parked directly in the output block and gated in place later, so no
    # (tn, 3O) scratch stays live across the body.
    sq = None
    for d in range(3):
        vd = v_ref[:, d * H:(d + 1) * H]                       # (tn, H)
        p = dot(vd, wv)                                        # (tn, H+O) f32
        p1 = p[:, :H]
        sq = p1 * p1 if sq is None else sq + p1 * p1
        ov_ref[:, d * O:(d + 1) * O] = p[:, H:].astype(ov_ref.dtype)
    vec1 = jnp.sqrt(sq)                                        # (tn, H)

    # update_net[0]: Linear(2H -> I); concat([x, vec1]) @ W computed as two
    # dots against the pre-split weight halves (no in-kernel concat).
    h = (dot(x, wux_ref[...])
         + dot(vec1.astype(wuv_ref.dtype), wuv_ref[...])
         + bu1_ref[...])
    h = act(h)                                                 # (tn, I)

    # update_net[2]: Linear(I -> 2O) as one fused dot; split lanes afterwards.
    out2 = dot(h.astype(wu2_ref.dtype), wu2_ref[...]) + bu2_ref[...]   # (tn, 2O)
    x_out = out2[:, :O]
    gate = out2[:, O:]
    if scalar_activation:
        x_out = act(x_out)
    ox_ref[...] = x_out.astype(ox_ref.dtype)

    # Gate the parked vec2 with one full lane-dense (tn, 3O) store.
    gate3 = jnp.concatenate([gate, gate, gate], axis=-1)       # (tn, 3O)
    ov_ref[...] = (gate3 * ov_ref[...].astype(jnp.float32)).astype(ov_ref.dtype)


def _choose_rows(n_rows, hidden, out_ch, in_itemsize, out_itemsize,
                 weight_bytes, block_rows, vmem_budget_bytes):
    # Double-buffered per-row bytes: x (H) + v (3H) inputs, x_out (O) + v_out
    # (3O) outputs.
    per_row = 2 * 4 * hidden * in_itemsize + 2 * 4 * out_ch * out_itemsize
    avail = max(vmem_budget_bytes - weight_bytes, per_row * 8)
    cap = max(8, (avail // per_row) // 8 * 8)
    tn = min(block_rows, cap)
    if tn >= n_rows:
        # Small problem: keep >=2 grid steps when possible so the "parallel"
        # row axis can be split across v7x's two TensorCores.
        tn = n_rows if n_rows <= 8 else _round_up(-(-n_rows // 2), 8)
    return int(max(1, tn)), int(per_row)


def gated_equivariant_block(
    x, v, w_vec1, w_vec2, w_up1, b_up1, w_up2, b_up2,
    *, activation="silu", scalar_activation=False,
    block_rows=512, vmem_budget_bytes=48 * 2**20, param_dtype=None,
):
    """Forward of GatedEquivariantBlock.

    x: (N, H) scalar features; v: (N, 3, H) vector features.
    Weights in PyTorch nn.Linear layout (out_features, in_features):
      w_vec1 (H, H), w_vec2 (O, H), w_up1 (I, 2H), b_up1 (I,),
      w_up2 (2O, I), b_up2 (2O,).
    Returns (x_out (N, O), v_out (N, 3, O)).
    """
    N, H = x.shape
    assert v.shape == (N, 3, H)
    O = w_vec2.shape[0]
    I = w_up1.shape[0]
    assert w_vec1.shape == (H, H)
    assert w_up1.shape == (I, 2 * H) and b_up1.shape == (I,)
    assert w_up2.shape == (2 * O, I) and b_up2.shape == (2 * O,)

    out_dtype = x.dtype
    pdt = jnp.dtype(param_dtype) if param_dtype is not None else jnp.dtype(x.dtype)

    # Weight plumbing (once, outside the kernel): transpose to (in, out), fuse
    # RHS weights sharing an LHS, split the concat boundary of update_net[0].
    wv = jnp.concatenate([w_vec1.T, w_vec2.T], axis=1).astype(pdt)   # (H, H+O)
    wux = w_up1[:, :H].T.astype(pdt)                                 # (H, I)
    wuv = w_up1[:, H:].T.astype(pdt)                                 # (H, I)
    bu1 = b_up1.reshape(1, I).astype(jnp.float32)
    wu2 = w_up2.T.astype(pdt)                                        # (I, 2O)
    bu2 = b_up2.reshape(1, 2 * O).astype(jnp.float32)

    # Free reshape (contiguous) — no XLA transpose, no extra HBM round trip.
    v2 = v.reshape(N, 3 * H)

    weights = (wv, wux, wuv, bu1, wu2, bu2)
    weight_bytes = sum(int(w.size) * jnp.dtype(w.dtype).itemsize for w in weights)
    tn, per_row = _choose_rows(
        N, H, O, jnp.dtype(x.dtype).itemsize, jnp.dtype(out_dtype).itemsize,
        weight_bytes, block_rows, vmem_budget_bytes)
    grid = (pl.cdiv(N, tn),)

    vmem_limit = int(min(
        100 * 2**20,
        max(32 * 2**20, weight_bytes + per_row * tn + (4 << 20))))

    kernel = functools.partial(
        _gated_equivariant_kernel,
        hidden=H, out_ch=O,
        activation=activation, scalar_activation=scalar_activation,
    )

    def run(single_buffer_weights):
        def resident(a):
            idx = lambda i, _nd=a.ndim: (0,) * _nd
            if single_buffer_weights:
                # Constant index map -> single-buffer the resident weights
                # (the second pipeline buffer would be pure VMEM waste).
                return pl.BlockSpec(a.shape, idx, pipeline_mode=pl.Buffered(1))
            return pl.BlockSpec(a.shape, idx)

        return pl.pallas_call(
            kernel,
            out_shape=(
                jax.ShapeDtypeStruct((N, O), out_dtype),
                jax.ShapeDtypeStruct((N, 3 * O), out_dtype),
            ),
            grid_spec=pl.GridSpec(
                grid=grid,
                in_specs=[
                    pl.BlockSpec((tn, H), lambda i: (i, 0)),       # x rows
                    pl.BlockSpec((tn, 3 * H), lambda i: (i, 0)),   # v rows (x|y|z)
                    resident(wv), resident(wux), resident(wuv), resident(bu1),
                    resident(wu2), resident(bu2),
                ],
                out_specs=(
                    pl.BlockSpec((tn, O), lambda i: (i, 0)),
                    pl.BlockSpec((tn, 3 * O), lambda i: (i, 0)),
                ),
            ),
            compiler_params=pltpu.CompilerParams(
                dimension_semantics=("parallel",),
                vmem_limit_bytes=vmem_limit,
            ),
        )(x, v2, *weights)

    try:
        x_out, v_out2 = run(True)
    except Exception:
        # Fallback for jax versions without BlockSpec(pipeline_mode=Buffered(1)).
        x_out, v_out2 = run(False)

    return x_out, v_out2.reshape(N, 3, O)


def gated_equivariant_block_ref(
    x, v, w_vec1, w_vec2, w_up1, b_up1, w_up2, b_up2,
    activation="silu", scalar_activation=False,
):
    """Pure-JAX reference matching the PyTorch forward."""
    act = _ACTIVATIONS[activation]
    O = w_vec2.shape[0]
    vec1 = jnp.linalg.norm(
        jnp.einsum("nch,gh->ncg", v, w_vec1, precision=_PREC), axis=-2)
    vec2 = jnp.einsum("nch,gh->ncg", v, w_vec2, precision=_PREC)
    xc = jnp.concatenate([x, vec1], axis=-1)
    h = act(jnp.einsum("nf,if->ni", xc, w_up1, precision=_PREC) + b_up1)
    out = jnp.einsum("ni,oi->no", h, w_up2, precision=_PREC) + b_up2
    x_out, gate = out[:, :O], out[:, O:]
    v_out = gate[:, None, :] * vec2
    if scalar_activation:
        x_out = act(x_out)
    return x_out, v_out


if __name__ == "__main__":
    key = jax.random.PRNGKey(0)
    # Small but lane-aligned shapes (real model widths are multiples of 128).
    N, H, O = 16, 128, 128
    I = H  # intermediate_channels defaults to hidden_channels

    ks = jax.random.split(key, 8)
    x = jax.random.normal(ks[0], (N, H), dtype=jnp.float32)
    v = jax.random.normal(ks[1], (N, 3, H), dtype=jnp.float32)
    w_vec1 = jax.random.normal(ks[2], (H, H), dtype=jnp.float32) * (1.0 / H) ** 0.5
    w_vec2 = jax.random.normal(ks[3], (O, H), dtype=jnp.float32) * (1.0 / H) ** 0.5
    w_up1 = jax.random.normal(ks[4], (I, 2 * H), dtype=jnp.float32) * (1.0 / (2 * H)) ** 0.5
    b_up1 = jax.random.normal(ks[5], (I,), dtype=jnp.float32) * 0.1
    w_up2 = jax.random.normal(ks[6], (2 * O, I), dtype=jnp.float32) * (1.0 / I) ** 0.5
    b_up2 = jax.random.normal(ks[7], (2 * O,), dtype=jnp.float32) * 0.1

    for scalar_activation in (False, True):
        x_out, v_out = gated_equivariant_block(
            x, v, w_vec1, w_vec2, w_up1, b_up1, w_up2, b_up2,
            activation="silu", scalar_activation=scalar_activation)
        jax.block_until_ready((x_out, v_out))

        x_exp, v_exp = gated_equivariant_block_ref(
            x, v, w_vec1, w_vec2, w_up1, b_up1, w_up2, b_up2,
            activation="silu", scalar_activation=scalar_activation)

        assert x_out.shape == (N, O) and v_out.shape == (N, 3, O)
        assert jnp.allclose(x_out, x_exp, atol=2e-2, rtol=2e-2)
        assert jnp.allclose(v_out, v_exp, atol=2e-2, rtol=2e-2)

    print("KERNEL_OK")
</pallas_src>

<mosaic_0001>
module attributes {stable_mosaic.version = 11 : i64} {
  func.func @_gated_equivariant_kernel(%arg0: i32, %arg1: memref<8x128xf32, #tpu.memory_space<vmem>>, %arg2: memref<8x384xf32, #tpu.memory_space<vmem>>, %arg3: memref<128x256xf32, #tpu.memory_space<vmem>>, %arg4: memref<128x128xf32, #tpu.memory_space<vmem>>, %arg5: memref<128x128xf32, #tpu.memory_space<vmem>>, %arg6: memref<1x128xf32, #tpu.memory_space<vmem>>, %arg7: memref<128x256xf32, #tpu.memory_space<vmem>>, %arg8: memref<1x256xf32, #tpu.memory_space<vmem>>, %arg9: memref<8x128xf32, #tpu.memory_space<vmem>>, %arg10: memref<8x384xf32, #tpu.memory_space<vmem>>) attributes {dimension_semantics = [#tpu.dimension_semantics<parallel>], iteration_bounds = array<i64: 2>, scalar_prefetch = 0 : i64, scratch_operands = 0 : i64, tpu.core_type = #tpu.core_type<tc>, window_params = [{transform_indices = @transform_0, window_bounds = array<i64: 8, 128>}, {transform_indices = @transform_1, window_bounds = array<i64: 8, 384>}, {pipeline_mode = #tpu.pipeline_mode<synchronous>, transform_indices = @transform_2, window_bounds = array<i64: 128, 256>}, {pipeline_mode = #tpu.pipeline_mode<synchronous>, transform_indices = @transform_3, window_bounds = array<i64: 128, 128>}, {pipeline_mode = #tpu.pipeline_mode<synchronous>, transform_indices = @transform_4, window_bounds = array<i64: 128, 128>}, {pipeline_mode = #tpu.pipeline_mode<synchronous>, transform_indices = @transform_5, window_bounds = array<i64: 1, 128>}, {pipeline_mode = #tpu.pipeline_mode<synchronous>, transform_indices = @transform_6, window_bounds = array<i64: 128, 256>}, {pipeline_mode = #tpu.pipeline_mode<synchronous>, transform_indices = @transform_7, window_bounds = array<i64: 1, 256>}, {transform_indices = @transform_8, window_bounds = array<i64: 8, 128>}, {transform_indices = @transform_9, window_bounds = array<i64: 8, 384>}]} {
    %c0 = arith.constant 0 : index
    %c0_0 = arith.constant 0 : index
    %0 = vector.load %arg1[%c0, %c0_0] : memref<8x128xf32, #tpu.memory_space<vmem>>, vector<8x128xf32>
    %c0_1 = arith.constant 0 : index
    %c0_2 = arith.constant 0 : index
    %1 = vector.load %arg3[%c0_1, %c0_2] : memref<128x256xf32, #tpu.memory_space<vmem>>, vector<128x256xf32>
    %c0_3 = arith.constant 0 : index
    %c0_4 = arith.constant 0 : index
    %2 = vector.load %arg2[%c0_3, %c0_4] : memref<8x384xf32, #tpu.memory_space<vmem>>, vector<8x128xf32>
    %cst = arith.constant dense<0.000000e+00> : vector<8x256xf32>
    %3 = tpu.matmul %2, %1, %cst {dimension_numbers = #tpu.dot_dimension_numbers<[1], [0], [0], [1], [0, 0, 1, 1], [], []>} : vector<8x128xf32>, vector<128x256xf32>, vector<8x256xf32> -> vector<8x256xf32>
    %4 = vector.extract_strided_slice %3 {offsets = [0, 0], sizes = [8, 128], strides = [1, 1]} : vector<8x256xf32> to vector<8x128xf32>
    %5 = arith.mulf %4, %4 : vector<8x128xf32>
    %6 = vector.extract_strided_slice %3 {offsets = [0, 128], sizes = [8, 128], strides = [1, 1]} : vector<8x256xf32> to vector<8x128xf32>
    %c0_5 = arith.constant 0 : index
    %c0_6 = arith.constant 0 : index
    %7 = vector.load %arg10[%c0_5, %c0_6] : memref<8x384xf32, #tpu.memory_space<vmem>>, vector<8x128xf32>
    tpu.vector_store %arg10[%c0_5, %c0_6], %6 {strides = array<i32>} : memref<8x384xf32, #tpu.memory_space<vmem>>, vector<8x128xf32>,
    %c0_7 = arith.constant 0 : index
    %c128 = arith.constant 128 : index
    %8 = vector.load %arg2[%c0_7, %c128] : memref<8x384xf32, #tpu.memory_space<vmem>>, vector<8x128xf32>
    %cst_8 = arith.constant dense<0.000000e+00> : vector<8x256xf32>
    %9 = tpu.matmul %8, %1, %cst_8 {dimension_numbers = #tpu.dot_dimension_numbers<[1], [0], [0], [1], [0, 0, 1, 1], [], []>} : vector<8x128xf32>, vector<128x256xf32>, vector<8x256xf32> -> vector<8x256xf32>
    %10 = vector.extract_strided_slice %9 {offsets = [0, 0], sizes = [8, 128], strides = [1, 1]} : vector<8x256xf32> to vector<8x128xf32>
    %11 = arith.mulf %10, %10 : vector<8x128xf32>
    %12 = arith.addf %5, %11 : vector<8x128xf32>
    %13 = vector.extract_strided_slice %9 {offsets = [0, 128], sizes = [8, 128], strides = [1, 1]} : vector<8x256xf32> to vector<8x128xf32>
    %c0_9 = arith.constant 0 : index
    %c128_10 = arith.constant 128 : index
    %14 = vector.load %arg10[%c0_9, %c128_10] : memref<8x384xf32, #tpu.memory_space<vmem>>, vector<8x128xf32>
    tpu.vector_store %arg10[%c0_9, %c128_10], %13 {strides = array<i32>} : memref<8x384xf32, #tpu.memory_space<vmem>>, vector<8x128xf32>,
    %c0_11 = arith.constant 0 : index
    %c256 = arith.constant 256 : index
    %15 = vector.load %arg2[%c0_11, %c256] : memref<8x384xf32, #tpu.memory_space<vmem>>, vector<8x128xf32>
    %cst_12 = arith.constant dense<0.000000e+00> : vector<8x256xf32>
    %16 = tpu.matmul %15, %1, %cst_12 {dimension_numbers = #tpu.dot_dimension_numbers<[1], [0], [0], [1], [0, 0, 1, 1], [], []>} : vector<8x128xf32>, vector<128x256xf32>, vector<8x256xf32> -> vector<8x256xf32>
    %17 = vector.extract_strided_slice %16 {offsets = [0, 0], sizes = [8, 128], strides = [1, 1]} : vector<8x256xf32> to vector<8x128xf32>
    %18 = arith.mulf %17, %17 : vector<8x128xf32>
    %19 = arith.addf %12, %18 : vector<8x128xf32>
    %20 = vector.extract_strided_slice %16 {offsets = [0, 128], sizes = [8, 128], strides = [1, 1]} : vector<8x256xf32> to vector<8x128xf32>
    %c0_13 = arith.constant 0 : index
    %c256_14 = arith.constant 256 : index
    %21 = vector.load %arg10[%c0_13, %c256_14] : memref<8x384xf32, #tpu.memory_space<vmem>>, vector<8x128xf32>
    tpu.vector_store %arg10[%c0_13, %c256_14], %20 {strides = array<i32>} : memref<8x384xf32, #tpu.memory_space<vmem>>, vector<8x128xf32>,
    %22 = math.sqrt %19 : vector<8x128xf32>
    %c0_15 = arith.constant 0 : index
    %c0_16 = arith.constant 0 : index
    %23 = vector.load %arg4[%c0_15, %c0_16] : memref<128x128xf32, #tpu.memory_space<vmem>>, vector<128x128xf32>
    %cst_17 = arith.constant dense<0.000000e+00> : vector<8x128xf32>
    %24 = tpu.matmul %0, %23, %cst_17 {dimension_numbers = #tpu.dot_dimension_numbers<[1], [0], [0], [1], [0, 0, 1, 1], [], []>} : vector<8x128xf32>, vector<128x128xf32>, vector<8x128xf32> -> vector<8x128xf32>
    %c0_18 = arith.constant 0 : index
    %c0_19 = arith.constant 0 : index
    %25 = vector.load %arg5[%c0_18, %c0_19] : memref<128x128xf32, #tpu.memory_space<vmem>>, vector<128x128xf32>
    %cst_20 = arith.constant dense<0.000000e+00> : vector<8x128xf32>
    %26 = tpu.matmul %22, %25, %cst_20 {dimension_numbers = #tpu.dot_dimension_numbers<[1], [0], [0], [1], [0, 0, 1, 1], [], []>} : vector<8x128xf32>, vector<128x128xf32>, vector<8x128xf32> -> vector<8x128xf32>
    %27 = arith.addf %24, %26 : vector<8x128xf32>
    %c0_21 = arith.constant 0 : index
    %c0_22 = arith.constant 0 : index
    %28 = vector.load %arg6[%c0_21, %c0_22] : memref<1x128xf32, #tpu.memory_space<vmem>>, vector<1x128xf32>
    %29 = vector.broadcast %28 : vector<1x128xf32> to vector<8x128xf32>
    %30 = arith.addf %27, %29 : vector<8x128xf32>
    %31 = arith.negf %30 : vector<8x128xf32>
    %32 = math.exp %31 : vector<8x128xf32>
    %cst_23 = arith.constant 1.000000e+00 : f32
    %33 = vector.broadcast %cst_23 : f32 to vector<8x128xf32>
    %34 = arith.addf %33, %32 : vector<8x128xf32>
    %35 = arith.divf %33, %34 : vector<8x128xf32>
    %36 = arith.mulf %30, %35 : vector<8x128xf32>
    %c0_24 = arith.constant 0 : index
    %c0_25 = arith.constant 0 : index
    %37 = vector.load %arg7[%c0_24, %c0_25] : memref<128x256xf32, #tpu.memory_space<vmem>>, vector<128x256xf32>
    %cst_26 = arith.constant dense<0.000000e+00> : vector<8x256xf32>
    %38 = tpu.matmul %36, %37, %cst_26 {dimension_numbers = #tpu.dot_dimension_numbers<[1], [0], [0], [1], [0, 0, 1, 1], [], []>} : vector<8x128xf32>, vector<128x256xf32>, vector<8x256xf32> -> vector<8x256xf32>
    %c0_27 = arith.constant 0 : index
    %c0_28 = arith.constant 0 : index
    %39 = vector.load %arg8[%c0_27, %c0_28] : memref<1x256xf32, #tpu.memory_space<vmem>>, vector<1x256xf32>
    %40 = vector.broadcast %39 : vector<1x256xf32> to vector<8x256xf32>
    %41 = arith.addf %38, %40 : vector<8x256xf32>
    %42 = vector.extract_strided_slice %41 {offsets = [0, 0], sizes = [8, 128], strides = [1, 1]} : vector<8x256xf32> to vector<8x128xf32>
    %43 = vector.extract_strided_slice %41 {offsets = [0, 128], sizes = [8, 128], strides = [1, 1]} : vector<8x256xf32> to vector<8x128xf32>
    %c0_29 = arith.constant 0 : index
    %c0_30 = arith.constant 0 : index
    %44 = vector.load %arg9[%c0_29, %c0_30] : memref<8x128xf32, #tpu.memory_space<vmem>>, vector<8x128xf32>
    tpu.vector_store %arg9[%c0_29, %c0_30], %42 {strides = array<i32>} : memref<8x128xf32, #tpu.memory_space<vmem>>, vector<8x128xf32>,
    %45 = tpu.concatenate %43, %43, %43 in 1 : vector<8x128xf32>, vector<8x128xf32>, vector<8x128xf32> -> vector<8x384xf32>
    %c0_31 = arith.constant 0 : index
    %c0_32 = arith.constant 0 : index
    %46 = vector.load %arg10[%c0_31, %c0_32] : memref<8x384xf32, #tpu.memory_space<vmem>>, vector<8x384xf32>
    %47 = arith.mulf %45, %46 : vector<8x384xf32>
    %c0_33 = arith.constant 0 : index
    %c0_34 = arith.constant 0 : index
    %48 = vector.load %arg10[%c0_33, %c0_34] : memref<8x384xf32, #tpu.memory_space<vmem>>, vector<8x384xf32>
    tpu.vector_store %arg10[%c0_33, %c0_34], %47 {strides = array<i32>} : memref<8x384xf32, #tpu.memory_space<vmem>>, vector<8x384xf32>,
    return
  }
  func.func @transform_0(%arg0: i32) -> (i32, i32) {
    %c0_i32 = arith.constant 0 : i32
    %c0_i32_0 = arith.constant 0 : i32
    return %arg0, %c0_i32 : i32, i32
  }
  func.func @transform_1(%arg0: i32) -> (i32, i32) {
    %c0_i32 = arith.constant 0 : i32
    %c0_i32_0 = arith.constant 0 : i32
    return %arg0, %c0_i32 : i32, i32
  }
  func.func @transform_2(%arg0: i32) -> (i32, i32) {
    %c0_i32 = arith.constant 0 : i32
    %c0_i32_0 = arith.constant 0 : i32
    %c0_i32_1 = arith.constant 0 : i32
    return %c0_i32, %c0_i32_0 : i32, i32
  }
  func.func @transform_3(%arg0: i32) -> (i32, i32) {
    %c0_i32 = arith.constant 0 : i32
    %c0_i32_0 = arith.constant 0 : i32
    %c0_i32_1 = arith.constant 0 : i32
    return %c0_i32, %c0_i32_0 : i32, i32
  }
  func.func @transform_4(%arg0: i32) -> (i32, i32) {
    %c0_i32 = arith.constant 0 : i32
    %c0_i32_0 = arith.constant 0 : i32
    %c0_i32_1 = arith.constant 0 : i32
    return %c0_i32, %c0_i32_0 : i32, i32
  }
  func.func @transform_5(%arg0: i32) -> (i32, i32) {
    %c0_i32 = arith.constant 0 : i32
    %c0_i32_0 = arith.constant 0 : i32
    %c0_i32_1 = arith.constant 0 : i32
    return %c0_i32, %c0_i32_0 : i32, i32
  }
  func.func @transform_6(%arg0: i32) -> (i32, i32) {
    %c0_i32 = arith.constant 0 : i32
    %c0_i32_0 = arith.constant 0 : i32
    %c0_i32_1 = arith.constant 0 : i32
    return %c0_i32, %c0_i32_0 : i32, i32
  }
  func.func @transform_7(%arg0: i32) -> (i32, i32) {
    %c0_i32 = arith.constant 0 : i32
    %c0_i32_0 = arith.constant 0 : i32
    %c0_i32_1 = arith.constant 0 : i32
    return %c0_i32, %c0_i32_0 : i32, i32
  }
  func.func @transform_8(%arg0: i32) -> (i32, i32) {
    %c0_i32 = arith.constant 0 : i32
    %c0_i32_0 = arith.constant 0 : i32
    return %arg0, %c0_i32 : i32, i32
  }
  func.func @transform_9(%arg0: i32) -> (i32, i32) {
    %c0_i32 = arith.constant 0 : i32
    %c0_i32_0 = arith.constant 0 : i32
    return %arg0, %c0_i32 : i32, i32
  }
}

module attributes {stable_mosaic.version = 11 : i64} {
  func.func @_gated_equivariant_kernel(%arg0: i32, %arg1: memref<8x128xf32, #tpu.memory_space<vmem>>, %arg2: memref<8x384xf32, #tpu.memory_space<vmem>>, %arg3: memref<128x256xf32, #tpu.memory_space<vmem>>, %arg4: memref<128x128xf32, #tpu.memory_space<vmem>>, %arg5: memref<128x128xf32, #tpu.memory_space<vmem>>, %arg6: memref<1x128xf32, #tpu.memory_space<vmem>>, %arg7: memref<128x256xf32, #tpu.memory_space<vmem>>, %arg8: memref<1x256xf32, #tpu.memory_space<vmem>>, %arg9: memref<8x128xf32, #tpu.memory_space<vmem>>, %arg10: memref<8x384xf32, #tpu.memory_space<vmem>>) attributes {dimension_semantics = [#tpu.dimension_semantics<parallel>], iteration_bounds = array<i64: 2>, scalar_prefetch = 0 : i64, scratch_operands = 0 : i64, tpu.core_type = #tpu.core_type<tc>, window_params = [{transform_indices = @transform_0, window_bounds = array<i64: 8, 128>}, {transform_indices = @transform_1, window_bounds = array<i64: 8, 384>}, {pipeline_mode = #tpu.pipeline_mode<synchronous>, transform_indices = @transform_2, window_bounds = array<i64: 128, 256>}, {pipeline_mode = #tpu.pipeline_mode<synchronous>, transform_indices = @transform_3, window_bounds = array<i64: 128, 128>}, {pipeline_mode = #tpu.pipeline_mode<synchronous>, transform_indices = @transform_4, window_bounds = array<i64: 128, 128>}, {pipeline_mode = #tpu.pipeline_mode<synchronous>, transform_indices = @transform_5, window_bounds = array<i64: 1, 128>}, {pipeline_mode = #tpu.pipeline_mode<synchronous>, transform_indices = @transform_6, window_bounds = array<i64: 128, 256>}, {pipeline_mode = #tpu.pipeline_mode<synchronous>, transform_indices = @transform_7, window_bounds = array<i64: 1, 256>}, {transform_indices = @transform_8, window_bounds = array<i64: 8, 128>}, {transform_indices = @transform_9, window_bounds = array<i64: 8, 384>}]} {
    %c0 = arith.constant 0 : index
    %c0_0 = arith.constant 0 : index
    %0 = vector.load %arg1[%c0, %c0_0] : memref<8x128xf32, #tpu.memory_space<vmem>>, vector<8x128xf32>
    %c0_1 = arith.constant 0 : index
    %c0_2 = arith.constant 0 : index
    %1 = vector.load %arg3[%c0_1, %c0_2] : memref<128x256xf32, #tpu.memory_space<vmem>>, vector<128x256xf32>
    %c0_3 = arith.constant 0 : index
    %c0_4 = arith.constant 0 : index
    %2 = vector.load %arg2[%c0_3, %c0_4] : memref<8x384xf32, #tpu.memory_space<vmem>>, vector<8x128xf32>
    %cst = arith.constant dense<0.000000e+00> : vector<8x256xf32>
    %3 = tpu.matmul %2, %1, %cst {dimension_numbers = #tpu.dot_dimension_numbers<[1], [0], [0], [1], [0, 0, 1, 1], [], []>} : vector<8x128xf32>, vector<128x256xf32>, vector<8x256xf32> -> vector<8x256xf32>
    %4 = vector.extract_strided_slice %3 {offsets = [0, 0], sizes = [8, 128], strides = [1, 1]} : vector<8x256xf32> to vector<8x128xf32>
    %5 = arith.mulf %4, %4 : vector<8x128xf32>
    %6 = vector.extract_strided_slice %3 {offsets = [0, 128], sizes = [8, 128], strides = [1, 1]} : vector<8x256xf32> to vector<8x128xf32>
    %c0_5 = arith.constant 0 : index
    %c0_6 = arith.constant 0 : index
    %7 = vector.load %arg10[%c0_5, %c0_6] : memref<8x384xf32, #tpu.memory_space<vmem>>, vector<8x128xf32>
    tpu.vector_store %arg10[%c0_5, %c0_6], %6 {strides = array<i32>} : memref<8x384xf32, #tpu.memory_space<vmem>>, vector<8x128xf32>,
    %c0_7 = arith.constant 0 : index
    %c128 = arith.constant 128 : index
    %8 = vector.load %arg2[%c0_7, %c128] : memref<8x384xf32, #tpu.memory_space<vmem>>, vector<8x128xf32>
    %cst_8 = arith.constant dense<0.000000e+00> : vector<8x256xf32>
    %9 = tpu.matmul %8, %1, %cst_8 {dimension_numbers = #tpu.dot_dimension_numbers<[1], [0], [0], [1], [0, 0, 1, 1], [], []>} : vector<8x128xf32>, vector<128x256xf32>, vector<8x256xf32> -> vector<8x256xf32>
    %10 = vector.extract_strided_slice %9 {offsets = [0, 0], sizes = [8, 128], strides = [1, 1]} : vector<8x256xf32> to vector<8x128xf32>
    %11 = arith.mulf %10, %10 : vector<8x128xf32>
    %12 = arith.addf %5, %11 : vector<8x128xf32>
    %13 = vector.extract_strided_slice %9 {offsets = [0, 128], sizes = [8, 128], strides = [1, 1]} : vector<8x256xf32> to vector<8x128xf32>
    %c0_9 = arith.constant 0 : index
    %c128_10 = arith.constant 128 : index
    %14 = vector.load %arg10[%c0_9, %c128_10] : memref<8x384xf32, #tpu.memory_space<vmem>>, vector<8x128xf32>
    tpu.vector_store %arg10[%c0_9, %c128_10], %13 {strides = array<i32>} : memref<8x384xf32, #tpu.memory_space<vmem>>, vector<8x128xf32>,
    %c0_11 = arith.constant 0 : index
    %c256 = arith.constant 256 : index
    %15 = vector.load %arg2[%c0_11, %c256] : memref<8x384xf32, #tpu.memory_space<vmem>>, vector<8x128xf32>
    %cst_12 = arith.constant dense<0.000000e+00> : vector<8x256xf32>
    %16 = tpu.matmul %15, %1, %cst_12 {dimension_numbers = #tpu.dot_dimension_numbers<[1], [0], [0], [1], [0, 0, 1, 1], [], []>} : vector<8x128xf32>, vector<128x256xf32>, vector<8x256xf32> -> vector<8x256xf32>
    %17 = vector.extract_strided_slice %16 {offsets = [0, 0], sizes = [8, 128], strides = [1, 1]} : vector<8x256xf32> to vector<8x128xf32>
    %18 = arith.mulf %17, %17 : vector<8x128xf32>
    %19 = arith.addf %12, %18 : vector<8x128xf32>
    %20 = vector.extract_strided_slice %16 {offsets = [0, 128], sizes = [8, 128], strides = [1, 1]} : vector<8x256xf32> to vector<8x128xf32>
    %c0_13 = arith.constant 0 : index
    %c256_14 = arith.constant 256 : index
    %21 = vector.load %arg10[%c0_13, %c256_14] : memref<8x384xf32, #tpu.memory_space<vmem>>, vector<8x128xf32>
    tpu.vector_store %arg10[%c0_13, %c256_14], %20 {strides = array<i32>} : memref<8x384xf32, #tpu.memory_space<vmem>>, vector<8x128xf32>,
    %22 = math.sqrt %19 : vector<8x128xf32>
    %c0_15 = arith.constant 0 : index
    %c0_16 = arith.constant 0 : index
    %23 = vector.load %arg4[%c0_15, %c0_16] : memref<128x128xf32, #tpu.memory_space<vmem>>, vector<128x128xf32>
    %cst_17 = arith.constant dense<0.000000e+00> : vector<8x128xf32>
    %24 = tpu.matmul %0, %23, %cst_17 {dimension_numbers = #tpu.dot_dimension_numbers<[1], [0], [0], [1], [0, 0, 1, 1], [], []>} : vector<8x128xf32>, vector<128x128xf32>, vector<8x128xf32> -> vector<8x128xf32>
    %c0_18 = arith.constant 0 : index
    %c0_19 = arith.constant 0 : index
    %25 = vector.load %arg5[%c0_18, %c0_19] : memref<128x128xf32, #tpu.memory_space<vmem>>, vector<128x128xf32>
    %cst_20 = arith.constant dense<0.000000e+00> : vector<8x128xf32>
    %26 = tpu.matmul %22, %25, %cst_20 {dimension_numbers = #tpu.dot_dimension_numbers<[1], [0], [0], [1], [0, 0, 1, 1], [], []>} : vector<8x128xf32>, vector<128x128xf32>, vector<8x128xf32> -> vector<8x128xf32>
    %27 = arith.addf %24, %26 : vector<8x128xf32>
    %c0_21 = arith.constant 0 : index
    %c0_22 = arith.constant 0 : index
    %28 = vector.load %arg6[%c0_21, %c0_22] : memref<1x128xf32, #tpu.memory_space<vmem>>, vector<1x128xf32>
    %29 = vector.broadcast %28 : vector<1x128xf32> to vector<8x128xf32>
    %30 = arith.addf %27, %29 : vector<8x128xf32>
    %31 = arith.negf %30 : vector<8x128xf32>
    %32 = math.exp %31 : vector<8x128xf32>
    %cst_23 = arith.constant 1.000000e+00 : f32
    %33 = vector.broadcast %cst_23 : f32 to vector<8x128xf32>
    %34 = arith.addf %33, %32 : vector<8x128xf32>
    %35 = arith.divf %33, %34 : vector<8x128xf32>
    %36 = arith.mulf %30, %35 : vector<8x128xf32>
    %c0_24 = arith.constant 0 : index
    %c0_25 = arith.constant 0 : index
    %37 = vector.load %arg7[%c0_24, %c0_25] : memref<128x256xf32, #tpu.memory_space<vmem>>, vector<128x256xf32>
    %cst_26 = arith.constant dense<0.000000e+00> : vector<8x256xf32>
    %38 = tpu.matmul %36, %37, %cst_26 {dimension_numbers = #tpu.dot_dimension_numbers<[1], [0], [0], [1], [0, 0, 1, 1], [], []>} : vector<8x128xf32>, vector<128x256xf32>, vector<8x256xf32> -> vector<8x256xf32>
    %c0_27 = arith.constant 0 : index
    %c0_28 = arith.constant 0 : index
    %39 = vector.load %arg8[%c0_27, %c0_28] : memref<1x256xf32, #tpu.memory_space<vmem>>, vector<1x256xf32>
    %40 = vector.broadcast %39 : vector<1x256xf32> to vector<8x256xf32>
    %41 = arith.addf %38, %40 : vector<8x256xf32>
    %42 = vector.extract_strided_slice %41 {offsets = [0, 0], sizes = [8, 128], strides = [1, 1]} : vector<8x256xf32> to vector<8x128xf32>
    %43 = vector.extract_strided_slice %41 {offsets = [0, 128], sizes = [8, 128], strides = [1, 1]} : vector<8x256xf32> to vector<8x128xf32>
    %c0_29 = arith.constant 0 : index
    %c0_30 = arith.constant 0 : index
    %44 = vector.load %arg9[%c0_29, %c0_30] : memref<8x128xf32, #tpu.memory_space<vmem>>, vector<8x128xf32>
    tpu.vector_store %arg9[%c0_29, %c0_30], %42 {strides = array<i32>} : memref<8x128xf32, #tpu.memory_space<vmem>>, vector<8x128xf32>,
    %45 = tpu.concatenate %43, %43, %43 in 1 : vector<8x128xf32>, vector<8x128xf32>, vector<8x128xf32> -> vector<8x384xf32>
    %c0_31 = arith.constant 0 : index
    %c0_32 = arith.constant 0 : index
    %46 = vector.load %arg10[%c0_31, %c0_32] : memref<8x384xf32, #tpu.memory_space<vmem>>, vector<8x384xf32>
    %47 = arith.mulf %45, %46 : vector<8x384xf32>
    %c0_33 = arith.constant 0 : index
    %c0_34 = arith.constant 0 : index
    %48 = vector.load %arg10[%c0_33, %c0_34] : memref<8x384xf32, #tpu.memory_space<vmem>>, vector<8x384xf32>
    tpu.vector_store %arg10[%c0_33, %c0_34], %47 {strides = array<i32>} : memref<8x384xf32, #tpu.memory_space<vmem>>, vector<8x384xf32>,
    return
  }
  func.func @transform_0(%arg0: i32) -> (i32, i32) {
    %c0_i32 = arith.constant 0 : i32
    %c0_i32_0 = arith.constant 0 : i32
    return %arg0, %c0_i32 : i32, i32
  }
  func.func @transform_1(%arg0: i32) -> (i32, i32) {
    %c0_i32 = arith.constant 0 : i32
    %c0_i32_0 = arith.constant 0 : i32
    return %arg0, %c0_i32 : i32, i32
  }
  func.func @transform_2(%arg0: i32) -> (i32, i32) {
    %c0_i32 = arith.constant 0 : i32
    %c0_i32_0 = arith.constant 0 : i32
    %c0_i32_1 = arith.constant 0 : i32
    return %c0_i32, %c0_i32_0 : i32, i32
  }
  func.func @transform_3(%arg0: i32) -> (i32, i32) {
    %c0_i32 = arith.constant 0 : i32
    %c0_i32_0 = arith.constant 0 : i32
    %c0_i32_1 = arith.constant 0 : i32
    return %c0_i32, %c0_i32_0 : i32, i32
  }
  func.func @transform_4(%arg0: i32) -> (i32, i32) {
    %c0_i32 = arith.constant 0 : i32
    %c0_i32_0 = arith.constant 0 : i32
    %c0_i32_1 = arith.constant 0 : i32
    return %c0_i32, %c0_i32_0 : i32, i32
  }
  func.func @transform_5(%arg0: i32) -> (i32, i32) {
    %c0_i32 = arith.constant 0 : i32
    %c0_i32_0 = arith.constant 0 : i32
    %c0_i32_1 = arith.constant 0 : i32
    return %c0_i32, %c0_i32_0 : i32, i32
  }
  func.func @transform_6(%arg0: i32) -> (i32, i32) {
    %c0_i32 = arith.constant 0 : i32
    %c0_i32_0 = arith.constant 0 : i32
    %c0_i32_1 = arith.constant 0 : i32
    return %c0_i32, %c0_i32_0 : i32, i32
  }
  func.func @transform_7(%arg0: i32) -> (i32, i32) {
    %c0_i32 = arith.constant 0 : i32
    %c0_i32_0 = arith.constant 0 : i32
    %c0_i32_1 = arith.constant 0 : i32
    return %c0_i32, %c0_i32_0 : i32, i32
  }
  func.func @transform_8(%arg0: i32) -> (i32, i32) {
    %c0_i32 = arith.constant 0 : i32
    %c0_i32_0 = arith.constant 0 : i32
    return %arg0, %c0_i32 : i32, i32
  }
  func.func @transform_9(%arg0: i32) -> (i32, i32) {
    %c0_i32 = arith.constant 0 : i32
    %c0_i32_0 = arith.constant 0 : i32
    return %arg0, %c0_i32 : i32, i32
  }
}

</mosaic_0001>

<bundles_post_ra>
// kernel: tpu_custom_call.1
= control target key start
LH: loop header
LB: loop body
LE: loop exit
PB: predicated region body
PF: predicated region fallthrough
CT: control target
= control target key end

     0   :  { %s2287_s0 = inlined_call_operand.hbm [shape: f32[16,128], index: 0, kind: input, shape index: {}]   ;;  %s2288_s1 = inlined_call_operand.hbm [shape: f32[16,384], index: 1, kind: input, shape index: {}]   ;;  %s2289_s2 = inlined_call_operand.hbm [shape: f32[128,256], index: 2, kind: input, shape index: {}]   ;;  %s2290_s3 = inlined_call_operand.hbm [shape: f32[128,128], index: 3, kind: input, shape index: {}]   ;;  %s2291_s4 = inlined_call_operand.hbm [shape: f32[128,128], index: 4, kind: input, shape index: {}]   ;;  %s2292_s5 = inlined_call_operand.vmem [shape: f32[1,128], index: 5, kind: input, shape index: {}]   ;;  %s2293_s6 = inlined_call_operand.hbm [shape: f32[128,256], index: 6, kind: input, shape index: {}]   ;;  %s2294_s7 = inlined_call_operand.vmem [shape: f32[1,256], index: 7, kind: input, shape index: {}]   ;;  %s2295_s8 = inlined_call_operand.hbm [shape: f32[16,128], index: 8, kind: output, shape index: {0}]   ;;  %s2296_s9 = inlined_call_operand.hbm [shape: f32[16,384], index: 9, kind: output, shape index: {1}]  }
   0x1   :  { %2301 = sst [smem:[#allocation24_spill]] %s2287_s0 }
   0x2   :  { %2302 = sst [smem:[#allocation25_spill]] %s2289_s2 }
   0x3   :  { %2303 = sst [smem:[#allocation26_spill]] %s2290_s3 }
   0x4   :  { %2304 = sst [smem:[#allocation27_spill]] %s2291_s4 }
   0x5   :  { %2305 = sst [smem:[#allocation28_spill]] %s2293_s6 }
   0x6   :  { %15 = vsyncpa [#allocation3], 0 }
   0x7   :  { %17 = vsyncpa [#allocation3 + $0x1], 0 }
   0x8   :  { %18 = vsyncpa [#allocation6], 0 }
   0x9   :  { %20 = vsyncpa [#allocation6 + $0x1], 0 }
   0xa   :  { %21 = vsyncpa [#allocation9], 0 }
   0xb   :  { %22 = vsyncpa [#allocation12], 0 }
   0xc   :  { %23 = vsyncpa [#allocation4], 0 }
   0xd   :  { %25 = vsyncpa [#allocation4 + $0x1], 0 }
   0xe   :  { %26 = vsyncpa [#allocation15], 0 }
   0xf   :  { %28 = vsyncpa [#allocation15 + $0x1], 0  ;;  %s1804_s30 = smov 0   ;;  %s1806_s10 = smov 0  }
  0x10   :  { %s1808_s11 = smov 0   ;;  %s1810_s12 = smov 0  }
  0x11 LB: > { %s1740_s13 = smov [#allocation7]   ;;  %s1825_s15 = sadd.s32 4294967295, %s1738_s12   ;;  %s1738_s12 = sphi %s1810_s12, %s2335_s12   ;;  %s1734_s11 = sphi %s1808_s11, %s2334_s11   ;;  %s1730_s10 = sphi %s1806_s10, %s2333_s10   ;;  %s1726_s30 = sphi %s1804_s30, %s2332_s30  }
  0x12   : > { %s281_s14 = sshll.u32 %s1740_s13, 4  ;;  %p1228_p0 = scmp.ge.s32.totalorder %s1738_s12, 1  ;;  %s282_s14 = int_to_ptr.vmem [resolvable:$true] %s281_s14 }
  0x13   : > { %p2297_p1 = scmp.eq.s32.totalorder %s1825_s15, 0  ;;  %p269_p2 = scmp.lt.s32.totalorder %s1738_s12, 3 }
  0x14   : > { %s1741_s17 = smov [#allocation8]   ;;  %s1742_s20 = smov [#allocation10]  }
  0x15   : > { %p1830_p3 = pnand %p1228_p0, %p269_p2  ;;  %s294_s18 = sshll.u32 %s1741_s17, 4  ;;  %s1843_s18 = int_to_ptr.vmem [resolvable:$true] %s294_s18 }
  0x16   : > { %s1845_s21 = sshll.u32 %s1742_s20, 4  ;;  %s1479_s22 = scalar_lea.vmem %s282_s14, 4096  ;;  %s308_s21 = int_to_ptr.vmem [resolvable:$true] %s1845_s21 }
  0x17   : > { %s2306_s16 = scalar_select %p1830_p3, 1, 0 }
  0x18   : > { %p1383_p5 = pneg %p1830_p3  ;;  %p1480_p8 = scmp.ne.s32.totalorder %s282_s14, %s1479_s22 }
  0x19   : > { %p1487_p11 = scmp.lt.s32.totalorder %s282_s14, %s282_s14  ;;  %p1488_p12 = scmp.lt.s32.totalorder %s1479_s22, %s1479_s22 }
  0x1a   : > { %p1839_p6 = pnand %p1383_p5, %p2297_p1 }
  0x1b   : > { %p1489_p13 = por %p1488_p12, %p1487_p11 }
  0x1c   : > { %p1470_p7 = pneg %p1839_p6 }
  0x1e   : > { %p1482_p9 = pnand %p1480_p8, %p1470_p7 }
  0x20   : > { %p1483_p10 = pneg %p1482_p9 }
  0x22   : > { %p1490_p0 = pnand %p1489_p13, %p1483_p10 }
  0x24   : > { %1493 = shalt.err (!%p1490_p0)
}
  0x25   : > { %s1743_s23 = smov 256   ;;  %s1744_s24 = smov 16  }
  0x26   : > { %s2308_s2 = sld [smem:[#allocation25_spill]]  ;;  %s1505_s27 = scalar_lea.vmem %s1843_s18, 2048 }
  0x27   : > { %p1506_p2 = scmp.ne.s32.totalorder %s1843_s18, %s1505_s27  ;;  %p1513_p9 = scmp.lt.s32.totalorder %s1843_s18, %s1843_s18 }
  0x28   : > { %p1514_p10 = scmp.lt.s32.totalorder %s1505_s27, %s1505_s27 }
  0x29   : > { %p1508_p5 = pnand %p1506_p2, %p1470_p7 }
  0x2a   : > { %p1515_p11 = por %p1514_p10, %p1513_p9 }
  0x2b   : > { %p1509_p8 = pneg %p1508_p5 }
  0x2c   : > { %1386 = dma.hbm_to_vmem [thread:$0]  (!%p1839_p6), %s2308_s2, 4096, %s282_s14, [#allocation6], %s1743_s23, %s1743_s23, %s1744_s24  }
  0x2d   : > { %p1516_p12 = pnand %p1515_p11, %p1509_p8 }
  0x2f   : > { %1519 = shalt.err (!%p1516_p12)
}
  0x30   : > { %s1745_s28 = smov 128   ;;  %s1746_s29 = smov 8  }
  0x31   : > { %s2309_s3 = sld [smem:[#allocation26_spill]]  ;;  %s1531_s17 = scalar_lea.vmem %s308_s21, 2048 }
  0x32   : > { %p1532_p13 = scmp.ne.s32.totalorder %s308_s21, %s1531_s17  ;;  %p1539_p5 = scmp.lt.s32.totalorder %s308_s21, %s308_s21 }
  0x33   : > { %p1540_p8 = scmp.lt.s32.totalorder %s1531_s17, %s1531_s17 }
  0x34   : > { %p1534_p0 = pnand %p1532_p13, %p1470_p7 }
  0x35   : > { %p1541_p9 = por %p1540_p8, %p1539_p5 }
  0x36   : > { %p1535_p2 = pneg %p1534_p0 }
  0x37   : > { %1389 = dma.hbm_to_vmem [thread:$0]  (!%p1839_p6), %s2309_s3, 2048, %s1843_s18, [#allocation9], %s1745_s28, %s1745_s28, %s1746_s29  }
  0x38   : > { %p1542_p10 = pnand %p1541_p9, %p1535_p2 }
  0x3a   : > { %1545 = shalt.err (!%p1542_p10)
}
  0x3b   : > { %s2310_s4 = sld [smem:[#allocation27_spill]]  ;;  %s1747_s18 = smov [#allocation11]  }
  0x3c   : > { %s323_s25 = sshll.u32 %s1747_s18, 4  ;;  %s324_s25 = int_to_ptr.vmem [resolvable:$true] %s323_s25 }
  0x3d   : > { %s1557_s26 = scalar_lea.vmem %s324_s25, 4096  ;;  %p1565_p0 = scmp.lt.s32.totalorder %s324_s25, %s324_s25 }
  0x3e   : > { %p1558_p11 = scmp.ne.s32.totalorder %s324_s25, %s1557_s26  ;;  %p1566_p5 = scmp.lt.s32.totalorder %s1557_s26, %s1557_s26 }
  0x40   : > { %p1560_p12 = pnand %p1558_p11, %p1470_p7  ;;  %p1567_p2 = por %p1566_p5, %p1565_p0 }
  0x41   : > { %1392 = dma.hbm_to_vmem [thread:$0]  (!%p1839_p6), %s2310_s4, 2048, %s308_s21, [#allocation9], %s1745_s28, %s1745_s28, %s1746_s29  }
  0x42   : > { %p1561_p13 = pneg %p1560_p12 }
  0x44   : > { %p1568_p8 = pnand %p1567_p2, %p1561_p13 }
  0x46   : > { %1571 = shalt.err (!%p1568_p8)
}
  0x47   : > { %s2311_s6 = sld [smem:[#allocation28_spill]]  ;;  %s1227_s19 = sadd.s32 4294967294, %s1738_s12  }
  0x48   : > { %s1895_s28 = sadd.s32 1, %s1738_s12   ;;  %s41_s13 = sadd.s32 1, %s1734_s11 }
  0x49   : > { %s38_s29 = ssub.s32 %s1738_s12, %s1895_s28  ;;  %p48_p9 = scmp.ne.s32.totalorder %s1734_s11, %s1730_s10 }
  0x4a   : > { %p39_p7 = scmp.eq.s32.totalorder %s38_s29, 0  ;;  %p49_p10 = scmp.eq.s32.totalorder %s1738_s12, 0 }
  0x4b   : > { %p54_p11 = scmp.ne.s32.totalorder %s1730_s10, %s1726_s30  ;;  %p230_p13 = scmp.eq.s32.totalorder %s1825_s15, 1 }
  0x4c   : > { %s1906_s14 = scalar_select %p39_p7, %s1734_s11, %s41_s13  }
  0x4d   : > { %1395 = dma.hbm_to_vmem [thread:$0]  (!%p1839_p6), %s2311_s6, 4096, %s324_s25, [#allocation12], %s1743_s23, %s1743_s23, %s1744_s24  }
  0x4e   : > { %2312 = sst [smem:[#allocation23_spill]] %s1906_s14  ;;  %p1908_p12 = por %p49_p10, %p48_p9 }
  0x4f   : > { %p1914_p6 = por %p2297_p1, %p54_p11  ;;  %p236_p0 = scmp.eq.s32.totalorder %s1227_s19, 1 }
  0x50   : > { %p1414_p5 = scmp.lt.s32.totalorder %s1738_s12, 2  ;;  %s1921_s24 = sand.u32 1, %s1734_s11  }
  0x51   : > { %s2314_s23 = scalar_select %p1914_p6, 1, 0 }
  0x52   : > { %p1923_p2 = por %p230_p13, %p48_p9  ;;  %p1927_p8 = por %p236_p0, %p54_p11 }
  0x53   : > { %s1234_s18 = sshll.u32 %s1921_s24, 3  ;;  %s1235_s25 = sshll.u32 %s1738_s12, 7 }
  0x54   : > { %s2315_s20 = scalar_select %p1923_p2, 1, 0 }
  0x55   : > { %s2316_s22 = scalar_select %p1927_p8, 1, 0 }
  0x56   : > { %s2317_s0 = sld [smem:[#allocation24_spill]]  ;;  %s344_s19 = scalar_lea.vmem [#allocation2], %s1234_s18 }
  0x57   : > { %s351_s29 = sshll.u32 %s344_s19, 4  ;;  %p1942_p7 = pnand %p1414_p5, %p1908_p12  ;;  %s1938_s29 = int_to_ptr.vmem [resolvable:$true] %s351_s29 }
  0x58   : > { %s1355_s3 = smul.u32 24, %s1921_s24  ;;  %s341_s4 = scalar_lea.sflag [#allocation3], %s1921_s24 }
  0x59   : > { %p1574_p10 = pneg %p1942_p7 }
  0x5c   : > { %s1936_s27 = scalar_lea.hbm %s2317_s0, %s1235_s25  ;;  %s1577_s17 = scalar_lea.hbm %s2317_s0, 256 }
  0x5d   : > { %s1572_s26 = scalar_lea.hbm %s1936_s27, 128  ;;  %p1578_p12 = scmp.lt.s32.totalorder %s1936_s27, %s2317_s0 }
  0x5e   : > { %p1573_p9 = scmp.ne.s32.totalorder %s1936_s27, %s1572_s26  ;;  %p1579_p0 = scmp.lt.s32.totalorder %s1577_s17, %s1572_s26 }
  0x60   : > { %p1575_p11 = pnand %p1574_p10, %p1573_p9  ;;  %p1580_p5 = por %p1579_p0, %p1578_p12 }
  0x62   : > { %p1576_p13 = pneg %p1575_p11 }
  0x64   : > { %p1581_p4 = pnand %p1580_p5, %p1576_p13 }
  0x66   : > { %1584 = shalt.err (!%p1581_p4)
}
  0x67   : > { %s1585_s24 = scalar_lea.vmem %s1938_s29, 128  ;;  %s1748_s18 = smov [#allocation2]  }
  0x68   : > { %p1586_p1 = scmp.ne.s32.totalorder %s1938_s29, %s1585_s24  ;;  %s1590_s25 = sshll.u32 %s1748_s18, 4  ;;  %s1591_s25 = int_to_ptr.vmem [resolvable:$false] %s1590_s25 }
  0x69   : > { %s1592_s2 = scalar_lea.vmem %s1591_s25, 256  ;;  %p1593_p8 = scmp.lt.s32.totalorder %s1938_s29, %s1591_s25 }
  0x6a   : > { %p1588_p9 = pnand %p1586_p1, %p1574_p10  ;;  %p1594_p2 = scmp.lt.s32.totalorder %s1592_s2, %s1585_s24 }
  0x6c   : > { %p1589_p11 = pneg %p1588_p9  ;;  %p1595_p6 = por %p1594_p2, %p1593_p8 }
  0x6e   : > { %p1596_p12 = pnand %p1595_p6, %p1589_p11 }
  0x70   : > { %1599 = shalt.err (!%p1596_p12)
}
  0x71   : > { %1399 = dma.hbm_to_vmem [thread:$0]  (!%p1942_p7), %s1936_s27, 128, %s1938_s29, %s341_s4  }
  0x72   : > { %s1356_s26 = smul.u32 384, %s1738_s12  ;;  %s362_s17 = scalar_lea.vmem [#allocation5], %s1355_s3 }
  0x73   : > { %s370_s21 = sshll.u32 %s362_s17, 4  ;;  %s2319_s2 = sand.u32 1, %s1738_s12   ;;  %s371_s21 = int_to_ptr.vmem [resolvable:$true] %s370_s21 }
  0x74   : > { %s368_s0 = scalar_lea.hbm %s2288_s1, %s1356_s26  ;;  %s359_s24 = scalar_lea.sflag [#allocation6], %s2319_s2 }
  0x75   : > { %s1600_s25 = scalar_lea.hbm %s368_s0, 384  ;;  %s1605_s4 = scalar_lea.hbm %s2288_s1, 768 }
  0x76   : > { %p1601_p1 = scmp.ne.s32.totalorder %s368_s0, %s1600_s25  ;;  %p1606_p2 = scmp.lt.s32.totalorder %s368_s0, %s2288_s1 }
  0x77   : > { %p1607_p8 = scmp.lt.s32.totalorder %s1605_s4, %s1600_s25 }
  0x78   : > { %p1603_p4 = pnand %p1601_p1, %p1574_p10 }
  0x79   : > { %p1608_p13 = por %p1607_p8, %p1606_p2 }
  0x7a   : > { %p1604_p6 = pneg %p1603_p4 }
  0x7c   : > { %p1609_p0 = pnand %p1608_p13, %p1604_p6 }
  0x7e   : > { %1612 = shalt.err (!%p1609_p0)
}
  0x7f   : > { %s1613_s29 = scalar_lea.vmem %s371_s21, 384  ;;  %s1749_s26 = smov [#allocation5]  }
  0x80   : > { %p1614_p5 = scmp.ne.s32.totalorder %s371_s21, %s1613_s29  ;;  %s1618_s17 = sshll.u32 %s1749_s26, 4  ;;  %s1619_s17 = int_to_ptr.vmem [resolvable:$false] %s1618_s17 }
  0x81   : > { %s1620_s6 = scalar_lea.vmem %s1619_s17, 768  ;;  %p1621_p12 = scmp.lt.s32.totalorder %s371_s21, %s1619_s17 }
  0x82   : > { %p1616_p9 = pnand %p1614_p5, %p1574_p10  ;;  %p1622_p1 = scmp.lt.s32.totalorder %s1620_s6, %s1613_s29 }
  0x84   : > { %p1617_p11 = pneg %p1616_p9  ;;  %p1623_p4 = por %p1622_p1, %p1621_p12 }
  0x86   : > { %p1624_p3 = pnand %p1623_p4, %p1617_p11 }
  0x88   : > { %1627 = shalt.err (!%p1624_p3)
}
  0x89   : > { %1402 = dma.hbm_to_vmem [thread:$0]  (!%p1942_p7), %s368_s0, 384, %s371_s21, %s359_s24  }
  0x8a   : > { %p2320_p6 = scmp.ne.s32.totalorder %s2306_s16, 0 }
  0x8b   : > { %s1996_s14 = sand.u32 (!%p2320_p6), 1, %s1730_s10   ;;  %p2321_p10 = scmp.ne.s32.totalorder (!%p2320_p6), %s2314_s23, 0 }
  0x8c   : > { %379 = sbr.rel (%p2320_p6) target bundleno = 901 (0x385), region = 52  ;;  %s1238_s19 = sshll.u32 (!%p2320_p6), %s1996_s14, 3 }
  0x8d   : > { %s382_s18 = scalar_lea.sflag (!%p2320_p6), [#allocation3], %s1996_s14  ;;  %s2002_s2 = scalar_lea.vmem (!%p2320_p6), [#allocation2], %s1238_s19 }
  0x91   : > { %1697 = dma.done.wait (%p2321_p10), %s382_s18, 128  }
  0x92   : > { %1699 = vsyncadd (%p2321_p10), %s382_s18, 4294967168  ;;  %s390_s0 = sand.u32 1, %s1825_s15   ;;  %s1357_s16 = smul.u32 24, %s1996_s14 }
  0x93   : > { %s391_s13 = scalar_lea.sflag [#allocation6], %s390_s0 }
  0x94   : > { %s2012_s21 = scalar_lea.vmem [#allocation5], %s1357_s16 }
  0x95   : > { %1701 = dma.done.wait (%p2321_p10), %s391_s13, 384  }
  0x96   : > { %1703 = vsyncadd (%p2321_p10), %s391_s13, 4294966912  ;;  %p2322_p3 = scmp.eq.s32.totalorder %s1825_s15, 0 }
  0x98   : > { %1705 = dma.done.wait (%p2322_p3), [#allocation6], 4096   ;;  %p2323_p7 = pmov %p2322_p3 }
  0x99   : > { %p2324_p2 = pmov %p2322_p3 }
  0x9a   : > { %1707 = vsyncadd (%p2323_p7), [#allocation6], 4294963200 }
  0x9b   : > { %1709 = dma.done.wait (%p2324_p2), [#allocation9], 4096   ;;  %p2325_p8 = pmov %p2324_p2 }
  0x9c   : > { %p2326_p13 = pmov %p2324_p2 }
  0x9d   : > { %1711 = vsyncadd (%p2325_p8), [#allocation9], 4294963200 }
  0x9e   : > { %1713 = dma.done.wait (%p2326_p13), [#allocation12], 4096   ;;  %p2327_p0 = pmov %p2324_p2 }
  0x9f   : > { %v1750_v0 = vmov 0.0   ;;  %v2032_v1 = vld [vmem:[#allocation7 + $0xf8] sm:$0xff]  ;;  %v2034_v2 = vld [vmem:[#allocation7 + $0xf0] sm:$0xff]  ;;  %v2036_v3 = vld [vmem:[#allocation7 + $0xe8] sm:$0xff]  ;;  %vm1751_vm0 = vmmov 0   ;;  %s1247_s27 = sshll.u32 %s1825_s15, 7 }
  0xa0   : > { %1715 = vsyncadd (%p2327_p0), [#allocation12], 4294963200  ;;  %553 = vmatprep.mubr.f32.mxu0 %v1750_v0  ;;  %627 = vmatprep.mubr.f32.mxu1 %v1750_v0  ;;  %v2040_v4 = vld [vmem:[#allocation7 + $0xe0] sm:$0xff]  ;;  %v2044_v5 = vld [vmem:[#allocation7 + $0xd8] sm:$0xff]  ;;  %s447_s3 = scalar_lea.vmem [#allocation13], %s1238_s19  ;;  %s1358_s26 = smul.u32 384, %s1825_s15 }
  0xa1   : > { %489 = vmatprep.subr.mxu0 %v2032_v1  ;;  %563 = vmatprep.subr.mxu1 %v2032_v1  ;;  %v2048_v6 = vld [vmem:[#allocation7 + $0xd0] sm:$0xff]  ;;  %v2052_v7 = vld [vmem:[#allocation7 + $0xc8] sm:$0xff]  ;;  %v2056_v8 = vld [vmem:[#allocation7 + $0xc0] sm:$0xff]  ;;  %s1050_s29 = sshll.u32 %s447_s3, 4  ;;  %s2202_s18 = scalar_lea.hbm %s2295_s8, %s1247_s27  ;;  %s2204_s29 = int_to_ptr.vmem [resolvable:$true] %s1050_s29 }
  0xa2   : > { %490 = vmatpush1.msra.mxu0 %v2034_v2  ;;  %564 = vmatpush1.msra.mxu1 %v2034_v2  ;;  %v2060_v9 = vld [vmem:[#allocation7 + $0xb8] sm:$0xff]  ;;  %v2064_v10 = vld [vmem:[#allocation7 + $0xb0] sm:$0xff]  ;;  %v2068_v11 = vld [vmem:[#allocation7 + $0xa8] sm:$0xff]  ;;  %s1032_s0 = scalar_lea.sflag [#allocation4], %s1996_s14  ;;  %s1628_s13 = scalar_lea.vmem %s2204_s29, 128 }
  0xa3   : > { %491 = vmatprep.subr.mxu0 %v2036_v3  ;;  %565 = vmatprep.subr.mxu1 %v2036_v3  ;;  %v2072_v12 = vld [vmem:[#allocation7 + $0xa0] sm:$0xff]  ;;  %v2076_v13 = vld [vmem:[#allocation7 + $0x98] sm:$0xff]  ;;  %v2080_v14 = vld [vmem:[#allocation7 + $0x90] sm:$0xff]  ;;  %p1629_p5 = scmp.ne.s32.totalorder %s2204_s29, %s1628_s13  ;;  %p2328_p9 = scmp.ne.s32.totalorder %s2315_s20, 0 }
  0xa4   : > { %492 = vmatpush1.msra.mxu0 %v2040_v4  ;;  %566 = vmatpush1.msra.mxu1 %v2040_v4  ;;  %v2084_v15 = vld [vmem:[#allocation7 + $0x88] sm:$0xff]  ;;  %v2088_v16 = vld [vmem:[#allocation7 + $0x80] sm:$0xff]  ;;  %v2092_v17 = vld [vmem:[#allocation7 + $0x78] sm:$0xff] }
  0xa5   : > { %493 = vmatprep.subr.mxu0 %v2044_v5  ;;  %567 = vmatprep.subr.mxu1 %v2044_v5  ;;  %v2096_v18 = vld [vmem:[#allocation7 + $0x70] sm:$0xff]  ;;  %v2100_v19 = vld [vmem:[#allocation7 + $0x68] sm:$0xff]  ;;  %v2104_v20 = vld [vmem:[#allocation7 + $0x60] sm:$0xff]  ;;  %p1630_p11 = pnand %p1629_p5, %p2328_p9 }
  0xa6   : > { %494 = vmatpush1.msra.mxu0 %v2048_v6  ;;  %568 = vmatpush1.msra.mxu1 %v2048_v6  ;;  %v2108_v21 = vld [vmem:[#allocation7 + $0x58] sm:$0xff]  ;;  %v2112_v22 = vld [vmem:[#allocation7 + $0x50] sm:$0xff]  ;;  %v465_v23 = vld [vmem:[#allocation7 + $0x48] sm:$0xff] }
  0xa7   : > { %495 = vmatprep.subr.mxu0 %v2052_v7  ;;  %569 = vmatprep.subr.mxu1 %v2052_v7  ;;  %v464_v24 = vld [vmem:[#allocation7 + $0x40] sm:$0xff]  ;;  %v463_v25 = vld [vmem:[#allocation7 + $0x38] sm:$0xff]  ;;  %v462_v26 = vld [vmem:[#allocation7 + $0x30] sm:$0xff]  ;;  %p1631_p12 = pneg %p1630_p11 }
  0xa8   : > { %496 = vmatpush1.msra.mxu0 %v2056_v8  ;;  %570 = vmatpush1.msra.mxu1 %v2056_v8  ;;  %v461_v27 = vld [vmem:[#allocation7 + $0x28] sm:$0xff]  ;;  %v460_v28 = vld [vmem:[#allocation7 + $0x20] sm:$0xff]  ;;  %v459_v29 = vld [vmem:[#allocation7 + $0x18] sm:$0xff] }
  0xa9   : > { %497 = vmatprep.subr.mxu0 %v2060_v9  ;;  %571 = vmatprep.subr.mxu1 %v2060_v9  ;;  %v458_v30 = vld [vmem:[#allocation7 + $0x10] sm:$0xff]  ;;  %v457_v31 = vld [vmem:[#allocation7 + $0x8] sm:$0xff]  ;;  %v456_v32 = vld [vmem:[#allocation7] sm:$0xff] }
  0xaa   : > { %498 = vmatpush1.msra.mxu0 %v2064_v10  ;;  %572 = vmatpush1.msra.mxu1 %v2064_v10  ;;  %v488_v33 = vld [vmem:[%s2012_s21] sm:$0xff]  ;;  %v562_v34 = vld [vmem:[%s2012_s21 + $0x8] sm:$0xff]  ;;  %v637_v35 = vld [vmem:[%s2012_s21 + $0x10] sm:$0xff]  ;;  %s1752_s21 = smov [#allocation13]  }
  0xab   : > { %499 = vmatprep.subr.mxu0 %v2068_v11  ;;  %573 = vmatprep.subr.mxu1 %v2068_v11  ;;  %v734_v36 = vld [vmem:[#allocation8 + $0x78] sm:$0xff]  ;;  %v733_v38 = vld [vmem:[#allocation8 + $0x70] sm:$0xff]  ;;  %v732_v40 = vld [vmem:[#allocation8 + $0x68] sm:$0xff]  ;;  %s1632_s23 = sshll.u32 %s1752_s21, 4  ;;  %s1633_s23 = int_to_ptr.vmem [resolvable:$false] %s1632_s23 }
  0xac   : > { %500 = vmatpush1.msra.mxu0 %v2072_v12  ;;  %574 = vmatpush1.msra.mxu1 %v2072_v12  ;;  %v750_v37 = vld [vmem:[#allocation10 + $0x78] sm:$0xff]  ;;  %v749_v39 = vld [vmem:[#allocation10 + $0x70] sm:$0xff]  ;;  %v748_v41 = vld [vmem:[#allocation10 + $0x68] sm:$0xff]  ;;  %s1634_s24 = scalar_lea.vmem %s1633_s23, 256  ;;  %p1635_p1 = scmp.lt.s32.totalorder %s2204_s29, %s1633_s23 }
  0xad   : > { %501 = vmatprep.subr.mxu0 %v2076_v13  ;;  %575 = vmatprep.subr.mxu1 %v2076_v13  ;;  %v731_v42 = vld [vmem:[#allocation8 + $0x60] sm:$0xff]  ;;  %v730_v44 = vld [vmem:[#allocation8 + $0x58] sm:$0xff]  ;;  %v729_v46 = vld [vmem:[#allocation8 + $0x50] sm:$0xff]  ;;  %p1636_p4 = scmp.lt.s32.totalorder %s1634_s24, %s1628_s13 }
  0xae   : > { %502 = vmatpush1.msra.mxu0 %v2080_v14  ;;  %576 = vmatpush1.msra.mxu1 %v2080_v14  ;;  %v747_v43 = vld [vmem:[#allocation10 + $0x60] sm:$0xff]  ;;  %v746_v45 = vld [vmem:[#allocation10 + $0x58] sm:$0xff]  ;;  %v745_v47 = vld [vmem:[#allocation10 + $0x50] sm:$0xff] }
  0xaf   : > { %503 = vmatprep.subr.mxu0 %v2084_v15  ;;  %577 = vmatprep.subr.mxu1 %v2084_v15  ;;  %v728_v48 = vld [vmem:[#allocation8 + $0x48] sm:$0xff]  ;;  %v727_v50 = vld [vmem:[#allocation8 + $0x40] sm:$0xff]  ;;  %v726_v52 = vld [vmem:[#allocation8 + $0x38] sm:$0xff]  ;;  %p1637_p6 = por %p1636_p4, %p1635_p1 }
  0xb0   : > { %504 = vmatpush1.msra.mxu0 %v2088_v16  ;;  %578 = vmatpush1.msra.mxu1 %v2088_v16  ;;  %v744_v49 = vld [vmem:[#allocation10 + $0x48] sm:$0xff]  ;;  %v743_v51 = vld [vmem:[#allocation10 + $0x40] sm:$0xff]  ;;  %v742_v53 = vld [vmem:[#allocation10 + $0x38] sm:$0xff] }
  0xb1   : > { %505 = vmatprep.subr.mxu0 %v2092_v17  ;;  %579 = vmatprep.subr.mxu1 %v2092_v17  ;;  %v725_v54 = vld [vmem:[#allocation8 + $0x30] sm:$0xff]  ;;  %v724_v56 = vld [vmem:[#allocation8 + $0x28] sm:$0xff]  ;;  %v723_v58 = vld [vmem:[#allocation8 + $0x20] sm:$0xff]  ;;  %p1638_p10 = pnand %p1637_p6, %p1631_p12 }
  0xb2   : > { %506 = vmatpush1.msra.mxu0 %v2096_v18  ;;  %580 = vmatpush1.msra.mxu1 %v2096_v18  ;;  %v741_v55 = vld [vmem:[#allocation10 + $0x30] sm:$0xff]  ;;  %v740_v57 = vld [vmem:[#allocation10 + $0x28] sm:$0xff]  ;;  %v739_v59 = vld [vmem:[#allocation10 + $0x20] sm:$0xff] }
  0xb3   : > { %507 = vmatprep.subr.mxu0 %v2100_v19  ;;  %581 = vmatprep.subr.mxu1 %v2100_v19  ;;  %v722_v60 = vld [vmem:[#allocation8 + $0x18] sm:$0xff]  ;;  %v721_v62 = vld [vmem:[#allocation8 + $0x10] sm:$0xff] }
  0xb4   : > { %508 = vmatpush1.msra.mxu0 %v2104_v20  ;;  %582 = vmatpush1.msra.mxu1 %v2104_v20  ;;  %v738_v61 = vld [vmem:[#allocation10 + $0x18] sm:$0xff]  ;;  %v737_v63 = vld [vmem:[#allocation10 + $0x10] sm:$0xff] }
  0xb5   : > { %509 = vmatprep.subr.mxu0 %v2108_v21  ;;  %583 = vmatprep.subr.mxu1 %v2108_v21 }
  0xb6   : > { %510 = vmatpush1.msra.mxu0 %v2112_v22  ;;  %584 = vmatpush1.msra.mxu1 %v2112_v22 }
  0xb7   : > { %511 = vmatprep.subr.mxu0 %v465_v23  ;;  %585 = vmatprep.subr.mxu1 %v465_v23 }
  0xb8   : > { %512 = vmatpush1.msra.mxu0 %v464_v24  ;;  %586 = vmatpush1.msra.mxu1 %v464_v24 }
  0xb9   : > { %513 = vmatprep.subr.mxu0 %v463_v25  ;;  %587 = vmatprep.subr.mxu1 %v463_v25 }
  0xba   : > { %514 = vmatpush1.msra.mxu0 %v462_v26  ;;  %588 = vmatpush1.msra.mxu1 %v462_v26 }
  0xbb   : > { %515 = vmatprep.subr.mxu0 %v461_v27  ;;  %589 = vmatprep.subr.mxu1 %v461_v27 }
  0xbc   : > { %516 = vmatpush1.msra.mxu0 %v460_v28  ;;  %590 = vmatpush1.msra.mxu1 %v460_v28 }
  0xbd   : > { %517 = vmatprep.subr.mxu0 %v459_v29  ;;  %591 = vmatprep.subr.mxu1 %v459_v29 }
  0xbe   : > { %518 = vmatpush1.msra.mxu0 %v458_v30  ;;  %592 = vmatpush1.msra.mxu1 %v458_v30 }
  0xbf   : > { %519 = vmatprep.subr.mxu0 %v457_v31  ;;  %593 = vmatprep.subr.mxu1 %v457_v31 }
  0xc0   : > { %520 = vmatpush1.msra.mxu0 %v456_v32  ;;  %594 = vmatpush1.msra.mxu1 %v456_v32 }
  0xc1   : > { %554 = vmatmul.mubr.f32.vlgmr.msra.gmra.mxu0 %v488_v33  ;;  %638 = vmatprep.subr.mxu0 %v2032_v1  ;;  %v720_v1 = vld [vmem:[#allocation8 + $0x8] sm:$0xff]  ;;  %v926_v33 = vld [vmem:[#allocation11 + $0xa0] sm:$0xff] }
  0xc2   : > { %628 = vmatmul.mubr.f32.vlgmr.msra.gmra.mxu1 %v562_v34  ;;  %639 = vmatpush1.msra.mxu0 %v2034_v2  ;;  %v736_v2 = vld [vmem:[#allocation10 + $0x8] sm:$0xff]  ;;  %v925_v34 = vld [vmem:[#allocation11 + $0x98] sm:$0xff] }
  0xc3   : > { %640 = vmatprep.subr.mxu0 %v2036_v3  ;;  %702 = vmatprep.mubr.f32.mxu0 %v1750_v0  ;;  %v719_v3 = vld [vmem:[#allocation8] sm:$0xff] }
  0xc4   : > { %641 = vmatpush1.msra.mxu0 %v2040_v4  ;;  %1285 = vmatprep.subr.mxu1 %v1750_v0  ;;  %v455_v4 = vld [vmem:[%s2002_s2] sm:$0xff]  ;;  %s2208_s2 = scalar_lea.vmem [#allocation14], %s1357_s16 }
  0xc5   : > { %642 = vmatprep.subr.mxu0 %v2044_v5  ;;  %1286 = vmatpush3.msra.mxu1 %v750_v37  ;;  %v735_v5 = vld [vmem:[#allocation10] sm:$0xff]  ;;  %s1064_s19 = sshll.u32 %s2208_s2, 4  ;;  %s2243_s19 = int_to_ptr.vmem [resolvable:$true] %s1064_s19 }
  0xc6   : > { %643 = vmatpush1.msra.mxu0 %v2048_v6  ;;  %1287 = vmatprep.subr.mxu1 %v1750_v0  ;;  %v922_v37 = vld [vmem:[#allocation11 + $0x80] sm:$0xff] }
  0xc7   : > { %644 = vmatprep.subr.mxu0 %v2052_v7  ;;  %1288 = vmatpush3.msra.mxu1 %v749_v39  ;;  %v920_v39 = vld [vmem:[#allocation11 + $0x70] sm:$0xff] }
  0xc8   : > { %645 = vmatpush1.msra.mxu0 %v2056_v8  ;;  %1289 = vmatprep.subr.mxu1 %v1750_v0 }
  0xc9   : > { %646 = vmatprep.subr.mxu0 %v2060_v9  ;;  %1290 = vmatpush3.msra.mxu1 %v748_v41  ;;  %v918_v41 = vld [vmem:[#allocation11 + $0x60] sm:$0xff] }
  0xca   : > { %647 = vmatpush1.msra.mxu0 %v2064_v10  ;;  %1291 = vmatprep.subr.mxu1 %v1750_v0 }
  0xcb   : > { %648 = vmatprep.subr.mxu0 %v2068_v11  ;;  %1292 = vmatpush3.msra.mxu1 %v747_v43  ;;  %v916_v43 = vld [vmem:[#allocation11 + $0x50] sm:$0xff] }
  0xcc   : > { %649 = vmatpush1.msra.mxu0 %v2072_v12  ;;  %1293 = vmatprep.subr.mxu1 %v1750_v0 }
  0xcd   : > { %650 = vmatprep.subr.mxu0 %v2076_v13  ;;  %1294 = vmatpush3.msra.mxu1 %v746_v45  ;;  %v914_v45 = vld [vmem:[#allocation11 + $0x40] sm:$0xff] }
  0xce   : > { %651 = vmatpush1.msra.mxu0 %v2080_v14  ;;  %1295 = vmatprep.subr.mxu1 %v1750_v0 }
  0xcf   : > { %652 = vmatprep.subr.mxu0 %v2084_v15  ;;  %1296 = vmatpush3.msra.mxu1 %v745_v47  ;;  %v912_v47 = vld [vmem:[#allocation11 + $0x30] sm:$0xff] }
  0xd0   : > { %653 = vmatpush1.msra.mxu0 %v2088_v16  ;;  %1297 = vmatprep.subr.mxu1 %v1750_v0 }
  0xd1   : > { %654 = vmatprep.subr.mxu0 %v2092_v17  ;;  %1298 = vmatpush3.msra.mxu1 %v744_v49  ;;  %v910_v49 = vld [vmem:[#allocation11 + $0x20] sm:$0xff] }
  0xd2   : > { %655 = vmatpush1.msra.mxu0 %v2096_v18  ;;  %1299 = vmatprep.subr.mxu1 %v1750_v0 }
  0xd3   : > { %656 = vmatprep.subr.mxu0 %v2100_v19  ;;  %1300 = vmatpush3.msra.mxu1 %v743_v51  ;;  %v908_v51 = vld [vmem:[#allocation11 + $0x10] sm:$0xff] }
  0xd4   : > { %657 = vmatpush1.msra.mxu0 %v2104_v20  ;;  %1301 = vmatprep.subr.mxu1 %v1750_v0 }
  0xd5   : > { %658 = vmatprep.subr.mxu0 %v2108_v21  ;;  %1302 = vmatpush3.msra.mxu1 %v742_v53  ;;  %v906_v53 = vld [vmem:[#allocation11] sm:$0xff] }
  0xd6   : > { %659 = vmatpush1.msra.mxu0 %v2112_v22  ;;  %1303 = vmatprep.subr.mxu1 %v1750_v0 }
  0xd7   : > { %660 = vmatprep.subr.mxu0 %v465_v23  ;;  %1304 = vmatpush3.msra.mxu1 %v741_v55  ;;  %v937_v23 = vld [vmem:[#allocation11 + $0xf8] sm:$0xff] }
  0xd8   : > { %661 = vmatpush1.msra.mxu0 %v464_v24  ;;  %1305 = vmatprep.subr.mxu1 %v1750_v0  ;;  %v936_v24 = vld [vmem:[#allocation11 + $0xf0] sm:$0xff] }
  0xd9   : > { %662 = vmatprep.subr.mxu0 %v463_v25  ;;  %1306 = vmatpush3.msra.mxu1 %v740_v57  ;;  %v935_v25 = vld [vmem:[#allocation11 + $0xe8] sm:$0xff] }
  0xda   : > { %663 = vmatpush1.msra.mxu0 %v462_v26  ;;  %1307 = vmatprep.subr.mxu1 %v1750_v0  ;;  %v934_v26 = vld [vmem:[#allocation11 + $0xe0] sm:$0xff] }
  0xdb   : > { %664 = vmatprep.subr.mxu0 %v461_v27  ;;  %1308 = vmatpush3.msra.mxu1 %v739_v59  ;;  %v933_v27 = vld [vmem:[#allocation11 + $0xd8] sm:$0xff] }
  0xdc   : > { %665 = vmatpush1.msra.mxu0 %v460_v28  ;;  %1309 = vmatprep.subr.mxu1 %v1750_v0  ;;  %v932_v28 = vld [vmem:[#allocation11 + $0xd0] sm:$0xff] }
  0xdd   : > { %666 = vmatprep.subr.mxu0 %v459_v29  ;;  %1310 = vmatpush3.msra.mxu1 %v738_v61  ;;  %v931_v29 = vld [vmem:[#allocation11 + $0xc8] sm:$0xff] }
  0xde   : > { %667 = vmatpush1.msra.mxu0 %v458_v30  ;;  %1311 = vmatprep.subr.mxu1 %v1750_v0  ;;  %v929_v30 = vld [vmem:[#allocation11 + $0xb8] sm:$0xff] }
  0xdf   : > { %668 = vmatprep.subr.mxu0 %v457_v31  ;;  %1312 = vmatpush3.msra.mxu1 %v737_v63  ;;  %v928_v31 = vld [vmem:[#allocation11 + $0xb0] sm:$0xff] }
  0xe0   : > { %669 = vmatpush1.msra.mxu0 %v456_v32  ;;  %1313 = vmatprep.subr.mxu1 %v1750_v0  ;;  %v927_v32 = vld [vmem:[#allocation11 + $0xa8] sm:$0xff] }
  0xe1   : > { %703 = vmatmul.mubr.f32.vlgmr.msra.gmra.mxu0 %v637_v35  ;;  %1320 = vmatprep.subr.mxu0 %v1750_v0  ;;  %v924_v35 = vld [vmem:[#allocation11 + $0x90] sm:$0xff] }
  0xe2   : > { %1321 = vmatpush3.msra.mxu0 %v734_v36  ;;  %1314 = vmatpush3.msra.mxu1 %v736_v2  ;;  %v923_v36 = vld [vmem:[#allocation11 + $0x88] sm:$0xff]  ;;  %v940_v2 = vlaneseq }
  0xe3   : > { %1322 = vmatprep.subr.mxu0 %v1750_v0  ;;  %1352 = vmatprep.mubr.msk.f32.mxu0 %vm1751_vm0, %v1750_v0 }
  0xe4   : > { %1323 = vmatpush3.msra.mxu0 %v733_v38  ;;  %1315 = vmatprep.subr.mxu1 %v1750_v0  ;;  %v921_v38 = vld [vmem:[#allocation11 + $0x78] sm:$0xff] }
  0xe5   : > { %1324 = vmatprep.subr.mxu0 %v1750_v0  ;;  %1316 = vmatpush3.msra.mxu1 %v735_v5  ;;  %v938_v5 = vld [vmem:[%s2294_s7] sm:$0x3] }
  0xe6   : > { %1325 = vmatpush3.msra.mxu0 %v732_v40  ;;  %1317 = vmatprep.mubr.msk.f32.mxu1 %vm1751_vm0, %v1750_v0  ;;  %v919_v40 = vld [vmem:[#allocation11 + $0x68] sm:$0xff] }
  0xe7   : > { %1326 = vmatprep.subr.mxu0 %v1750_v0  ;;  %950 = vmatprep.subr.mxu1 %v937_v23 }
  0xe8   : > { %1327 = vmatpush3.msra.mxu0 %v731_v42  ;;  %v917_v42 = vld [vmem:[#allocation11 + $0x58] sm:$0xff] }
  0xe9   : > { %1328 = vmatprep.subr.mxu0 %v1750_v0 }
  0xea   : > { %1329 = vmatpush3.msra.mxu0 %v730_v44  ;;  %v915_v44 = vld [vmem:[#allocation11 + $0x48] sm:$0xff] }
  0xeb   : > { %1330 = vmatprep.subr.mxu0 %v1750_v0 }
  0xec   : > { %1331 = vmatpush3.msra.mxu0 %v729_v46  ;;  %v913_v46 = vld [vmem:[#allocation11 + $0x38] sm:$0xff] }
  0xed   : > { %1332 = vmatprep.subr.mxu0 %v1750_v0 }
  0xee   : > { %1333 = vmatpush3.msra.mxu0 %v728_v48  ;;  %v911_v48 = vld [vmem:[#allocation11 + $0x28] sm:$0xff] }
  0xef   : > { %1334 = vmatprep.subr.mxu0 %v1750_v0 }
  0xf0   : > { %1335 = vmatpush3.msra.mxu0 %v727_v50  ;;  %v909_v50 = vld [vmem:[#allocation11 + $0x18] sm:$0xff] }
  0xf1   : > { %1336 = vmatprep.subr.mxu0 %v1750_v0 }
  0xf2   : > { %1337 = vmatpush3.msra.mxu0 %v726_v52  ;;  %v907_v52 = vld [vmem:[#allocation11 + $0x8] sm:$0xff] }
  0xf3   : > { %1338 = vmatprep.subr.mxu0 %v1750_v0 }
  0xf4   : > { %1339 = vmatpush3.msra.mxu0 %v725_v54 }
  0xf5   : > { %1340 = vmatprep.subr.mxu0 %v1750_v0 }
  0xf6   : > { %1341 = vmatpush3.msra.mxu0 %v724_v56  ;;  %v1244_v56 = vld [vmem:[%s2292_s5] ss:$0 sm:$0xff] }
  0xf7   : > { %1342 = vmatprep.subr.mxu0 %v1750_v0 }
  0xf8   : > { %1343 = vmatpush3.msra.mxu0 %v723_v58 }
  0xf9   : > { %1344 = vmatprep.subr.mxu0 %v1750_v0 }
  0xfa   : > { %1345 = vmatpush3.msra.mxu0 %v722_v60 }
  0xfb   : > { %1346 = vmatprep.subr.mxu0 %v1750_v0 }
  0xfc   : > { %1347 = vmatpush3.msra.mxu0 %v721_v62 }
  0xfd   : > { %1348 = vmatprep.subr.mxu0 %v1750_v0 }
  0xfe   : > { %1349 = vmatpush3.msra.mxu0 %v720_v1 }
  0xff   : > { %1350 = vmatprep.subr.mxu0 %v1750_v0 }
 0x100   : > { %1351 = vmatpush3.msra.mxu0 %v719_v3  ;;  %v941_v3 = vshrl.u32 %v940_v2, 7 }
 0x101   : > { %1353 = vmatmul.mubr.f32.vlgmr.msra.gmra.mxu0 %v455_v4 }
 0x102   : > { %v942_v4 = vsub.s32 0, %v941_v3 }
 0x181   : > { %v555_v6 = vpop.f32.mrf.mxu0 }
 0x182   : > { %v629_v7 = vpop.f32.mrf.mxu1  ;;  %v560_v8 = vmul.f32 %v555_v6, %v555_v6  ;;  %v946_v6 = vsub.s32 1, %v941_v3 }
 0x183   : > { %v634_v9 = vmul.f32 %v629_v7, %v629_v7  ;;  %v2181_v10 = vpop.f32.mrf.mxu0  ;;  %v943_v7 = vrot.slane %v938_v5, %v942_v4 }
 0x184   : > { %v631_v54 = vpop.f32.mrf.mxu1 }
 0x185   : > { %v635_v12 = vadd.f32 %v634_v9, %v560_v8  ;;  %v947_v8 = vrot.slane %v938_v5, %v946_v6 }
 0x1a1   : > { %v704_v11 = vpop.f32.mrf.mxu0 }
 0x1a2   : > { %v709_v13 = vmul.f32 %v704_v11, %v704_v11 }
 0x1a3   : > { %v2184_v20 = vpop.f32.mrf.mxu0 }
 0x1a4   : > { %v710_v14 = vadd.f32 %v709_v13, %v635_v12 }
 0x1a6   : > { %1462 = vrsqrt.f32 %v710_v14  ;;  %vm714_vm1 = vcmp.eq.f32.partialorder %v710_v14, inf  ;;  %v717_v17 = vand.u32 2147483648, %v710_v14  ;;  %vm716_vm2 = vcmp.eq.f32.partialorder %v710_v14, 0.0 }
 0x1b3   : > { %v1463_v15 = vpop.eup %1462 }
 0x1b4   : > { %v713_v16 = vmul.f32 %v1463_v15, %v710_v14 }
 0x1b6   : > { %v715_v18 = vsel %vm714_vm1, %v710_v14, %v713_v16 }
 0x1b7   : > { %v718_v19 = vsel %vm716_vm2, %v717_v17, %v715_v18 }
 0x1b8   : > { %1318 = vmatmul.mubr.f32.vlgmr.msra.gmra.mxu1 %v718_v19 }
 0x1b9   : > { %1014 = vmatprep.mubr.f32.mxu1 %v1750_v0  ;;  %951 = vmatpush1.msra.mxu1 %v936_v24  ;;  %v930_v0 = vld [vmem:[#allocation11 + $0xc0] sm:$0xff] }
 0x1ba   : > { %952 = vmatprep.subr.mxu1 %v935_v25 }
 0x1bb   : > { %953 = vmatpush1.msra.mxu1 %v934_v26 }
 0x1bc   : > { %954 = vmatprep.subr.mxu1 %v933_v27 }
 0x1bd   : > { %955 = vmatpush1.msra.mxu1 %v932_v28 }
 0x1be   : > { %956 = vmatprep.subr.mxu1 %v931_v29 }
 0x1bf   : > { %957 = vmatpush1.msra.mxu1 %v930_v0 }
 0x1c0   : > { %958 = vmatprep.subr.mxu1 %v929_v30 }
 0x1c1   : > { %v2186_v21 = vpop.f32.mrf.mxu0  ;;  %959 = vmatpush1.msra.mxu1 %v928_v31 }
 0x1c2   : > { %960 = vmatprep.subr.mxu1 %v927_v32 }
 0x1c3   : > { %v1354_v22 = vpop.f32.mrf.mxu0  ;;  %961 = vmatpush1.msra.mxu1 %v926_v33 }
 0x1c4   : > { %962 = vmatprep.subr.mxu1 %v925_v34 }
 0x1c5   : > { %963 = vmatpush1.msra.mxu1 %v924_v35 }
 0x1c6   : > { %964 = vmatprep.subr.mxu1 %v923_v36 }
 0x1c7   : > { %965 = vmatpush1.msra.mxu1 %v922_v37 }
 0x1c8   : > { %966 = vmatprep.subr.mxu1 %v921_v38 }
 0x1c9   : > { %967 = vmatpush1.msra.mxu1 %v920_v39 }
 0x1ca   : > { %968 = vmatprep.subr.mxu1 %v919_v40 }
 0x1cb   : > { %969 = vmatpush1.msra.mxu1 %v918_v41 }
 0x1cc   : > { %970 = vmatprep.subr.mxu1 %v917_v42 }
 0x1cd   : > { %971 = vmatpush1.msra.mxu1 %v916_v43 }
 0x1ce   : > { %972 = vmatprep.subr.mxu1 %v915_v44 }
 0x1cf   : > { %973 = vmatpush1.msra.mxu1 %v914_v45 }
 0x1d0   : > { %974 = vmatprep.subr.mxu1 %v913_v46 }
 0x1d1   : > { %975 = vmatpush1.msra.mxu1 %v912_v47 }
 0x1d2   : > { %976 = vmatprep.subr.mxu1 %v911_v48 }
 0x1d3   : > { %977 = vmatpush1.msra.mxu1 %v910_v49 }
 0x1d4   : > { %978 = vmatprep.subr.mxu1 %v909_v50 }
 0x1d5   : > { %979 = vmatpush1.msra.mxu1 %v908_v51 }
 0x1d6   : > { %980 = vmatprep.subr.mxu1 %v907_v52 }
 0x1d7   : > { %981 = vmatpush1.msra.mxu1 %v906_v53 }
 0x278   : > { %v817_v55 = vpop.f32.mrf.mxu1 }
 0x279   : > { %v888_v57 = vadd.f32 %v2186_v21, %v817_v55 }
 0x27a   : > { %v1319_v58 = vpop.f32.mrf.mxu1 }
 0x27b   : > { %v898_v59 = vadd.f32 %v1244_v56, %v888_v57 }
 0x27d   : > { %v1245_v60 = vmul.f32 -1.442695, %v898_v59 }
 0x27f   : > { %1464 = vpow2.f32 %v1245_v60 }
 0x28c   : > { %v1465_v61 = vpop.eup %1464 }
 0x28d   : > { %v902_v62 = vadd.f32 1.0, %v1465_v61 }
 0x28f   : > { %1466 = vrcp.f32 %v902_v62 }
 0x29c   : > { %v1467_v63 = vpop.eup %1466 }
 0x29d   : > { %v905_v1 = vmul.f32 %v1467_v63, %v898_v59 }
 0x29f   : > { %1015 = vmatmul.mubr.f32.vlgmr.msra.gmra.mxu1 %v905_v1 }
 0x35f   : > { %v1016_v9 = vpop.f32.mrf.mxu1 }
 0x360   : > { %v1017_v11 = vadd.f32 %v1016_v9, %v943_v7 }
 0x361   : > { %v1018_v12 = vpop.f32.mrf.mxu1 }
 0x362   : > { %1021 = vst [vmem:[%s447_s3] sm:$0xff] %v1017_v11  ;;  %v1019_v13 = vadd.f32 %v1018_v12, %v947_v8 }
 0x363   : > { %1641 = shalt.err (!%p1638_p10)
}
 0x364   : > { %s1642_s16 = scalar_lea.hbm %s2202_s18, 128  ;;  %s1646_s27 = scalar_lea.hbm %s2295_s8, 256 }
 0x365   : > { %p1643_p3 = scmp.ne.s32.totalorder %s2202_s18, %s1642_s16  ;;  %p1647_p8 = scmp.lt.s32.totalorder %s2202_s18, %s2295_s8 }
 0x366   : > { %p1648_p13 = scmp.lt.s32.totalorder %s1646_s27, %s1642_s16 }
 0x367   : > { %p1644_p7 = pnand %p1643_p3, %p2328_p9 }
 0x368   : > { %p1649_p0 = por %p1648_p13, %p1647_p8 }
 0x369   : > { %p1645_p2 = pneg %p1644_p7 }
 0x36b   : > { %p1650_p5 = pnand %p1649_p0, %p1645_p2 }
 0x36d   : > { %1653 = shalt.err (!%p1650_p5)
}
 0x36e   : > { %1379 = dma.vmem_to_hbm [thread:$0]  (%p2328_p9), %s2204_s29, 128, %s2202_s18, %s1032_s0   ;;  %v1025_v14 = vmul.f32 %v1019_v13, %v2181_v10  ;;  %v1026_v15 = vmul.f32 %v1019_v13, %v631_v54  ;;  %v1027_v16 = vmul.f32 %v1019_v13, %v2184_v20 }
 0x36f   : > { %s2239_s21 = scalar_lea.hbm %s2296_s9, %s1358_s26  ;;  %s1037_s29 = scalar_lea.sflag [#allocation15], %s1996_s14 }
 0x370   : > { %1028 = vst [vmem:[%s2208_s2] sm:$0xff] %v1025_v14  ;;  %1029 = vst [vmem:[%s2208_s2 + $0x8] sm:$0xff] %v1026_v15  ;;  %s1654_s18 = scalar_lea.vmem %s2243_s19, 384  ;;  %s1753_s15 = smov [#allocation14]  }
 0x371   : > { %1030 = vst [vmem:[%s2208_s2 + $0x10] sm:$0xff] %v1027_v16  ;;  %p1655_p11 = scmp.ne.s32.totalorder %s2243_s19, %s1654_s18  ;;  %s1658_s0 = sshll.u32 %s1753_s15, 4  ;;  %s1659_s0 = int_to_ptr.vmem [resolvable:$false] %s1658_s0 }
 0x372   : > { %s1660_s26 = scalar_lea.vmem %s1659_s0, 768  ;;  %p1661_p4 = scmp.lt.s32.totalorder %s2243_s19, %s1659_s0 }
 0x373   : > { %p1656_p12 = pnand %p1655_p11, %p2328_p9  ;;  %p1662_p6 = scmp.lt.s32.totalorder %s1660_s26, %s1654_s18 }
 0x375   : > { %p1657_p1 = pneg %p1656_p12  ;;  %p1663_p10 = por %p1662_p6, %p1661_p4 }
 0x377   : > { %p1664_p3 = pnand %p1663_p10, %p1657_p1 }
 0x379   : > { %1667 = shalt.err (!%p1664_p3)
}
 0x37a   : > { %s1668_s2 = scalar_lea.hbm %s2239_s21, 384  ;;  %s1672_s24 = scalar_lea.hbm %s2296_s9, 768 }
 0x37b   : > { %p1669_p7 = scmp.ne.s32.totalorder %s2239_s21, %s1668_s2  ;;  %p1673_p13 = scmp.lt.s32.totalorder %s2239_s21, %s2296_s9 }
 0x37c   : > { %p1674_p0 = scmp.lt.s32.totalorder %s1672_s24, %s1668_s2 }
 0x37d   : > { %p1670_p2 = pnand %p1669_p7, %p2328_p9 }
 0x37e   : > { %p1675_p5 = por %p1674_p0, %p1673_p13 }
 0x37f   : > { %p1671_p8 = pneg %p1670_p2 }
 0x381   : > { %p1676_p11 = pnand %p1675_p5, %p1671_p8 }
 0x383   : > { %1679 = shalt.err (!%p1676_p11)
}
 0x384   : > { %1380 = dma.vmem_to_hbm [thread:$0]  (%p2328_p9), %s2243_s19, 384, %s2239_s21, %s1037_s29  }
 0x385 PF: > { %s1076_s4 = sand.u32 1, %s1726_s30   ;;  %p2329_p12 = scmp.ne.s32.totalorder %s2316_s22, 0 }
 0x386   : > { %p2330_p1 = scmp.ge.s32.totalorder %s1738_s12, 2  ;;  %s1077_s27 = scalar_lea.sflag [#allocation4], %s1076_s4 }
 0x388   : > { %p1404_p4 = pnand %p2330_p1, %p2329_p12 }
 0x38a   : > { %p1405_p6 = pneg %p1404_p4 }
 0x38c   : > { %1717 = dma.done.wait (%p1405_p6), %s1077_s27, 128  }
 0x38d   : > { %1719 = vsyncadd (%p1405_p6), %s1077_s27, 4294967168  ;;  %s1086_s3 = scalar_lea.sflag [#allocation15], %s1076_s4 }
 0x38e   : > { %1721 = dma.done.wait (%p1405_p6), %s1086_s3, 384  }
 0x38f   : > { %1723 = vsyncadd (%p1405_p6), %s1086_s3, 4294966912  ;;  %s2331_s20 = sld [smem:[#allocation23_spill]]  ;;  %p31_p9 = scmp.ge.s32.totalorder %s1895_s28, 4  }
 0x390   : > { %s2332_s30 = smov %s1730_s10  ;;  %s2333_s10 = smov %s1734_s11 }
 0x391   : > { %s2335_s12 = smov %s1895_s28  ;;  %33 = sbr.rel (!%p31_p9) target bundleno = 17 (0x11), region = 143 }
 0x395   : > { %s2334_s11 = smov %s2331_s20 }
 0x396   :  { %1091 = vsyncpa [#allocation3], 1 }
 0x397   :  { %1093 = vsyncpa [#allocation3 + $0x1], 1 }
 0x398   :  { %1094 = vsyncpa [#allocation6], 1 }
 0x399   :  { %1096 = vsyncpa [#allocation6 + $0x1], 1 }
 0x39a   :  { %1097 = vsyncpa [#allocation9], 1 }
 0x39b   :  { %1098 = vsyncpa [#allocation12], 1 }
 0x39c   :  { %1099 = vsyncpa [#allocation4], 1 }
 0x39d   :  { %1101 = vsyncpa [#allocation4 + $0x1], 1 }
 0x39e   :  { %1102 = vsyncpa [#allocation15], 1 }
 0x39f   :  { %1104 = vsyncpa [#allocation15 + $0x1], 1 }

// kernel: tpu_custom_call.1
= control target key start
LH: loop header
LB: loop body
LE: loop exit
PB: predicated region body
PF: predicated region fallthrough
CT: control target
= control target key end

     0   :  { %s2287_s0 = inlined_call_operand.hbm [shape: f32[16,128], index: 0, kind: input, shape index: {}]   ;;  %s2288_s1 = inlined_call_operand.hbm [shape: f32[16,384], index: 1, kind: input, shape index: {}]   ;;  %s2289_s2 = inlined_call_operand.hbm [shape: f32[128,256], index: 2, kind: input, shape index: {}]   ;;  %s2290_s3 = inlined_call_operand.hbm [shape: f32[128,128], index: 3, kind: input, shape index: {}]   ;;  %s2291_s4 = inlined_call_operand.hbm [shape: f32[128,128], index: 4, kind: input, shape index: {}]   ;;  %s2292_s5 = inlined_call_operand.vmem [shape: f32[1,128], index: 5, kind: input, shape index: {}]   ;;  %s2293_s6 = inlined_call_operand.hbm [shape: f32[128,256], index: 6, kind: input, shape index: {}]   ;;  %s2294_s7 = inlined_call_operand.vmem [shape: f32[1,256], index: 7, kind: input, shape index: {}]   ;;  %s2295_s8 = inlined_call_operand.hbm [shape: f32[16,128], index: 8, kind: output, shape index: {0}]   ;;  %s2296_s9 = inlined_call_operand.hbm [shape: f32[16,384], index: 9, kind: output, shape index: {1}]  }
   0x1   :  { %2301 = sst [smem:[#allocation24_spill]] %s2287_s0 }
   0x2   :  { %2302 = sst [smem:[#allocation25_spill]] %s2289_s2 }
   0x3   :  { %2303 = sst [smem:[#allocation26_spill]] %s2290_s3 }
   0x4   :  { %2304 = sst [smem:[#allocation27_spill]] %s2291_s4 }
   0x5   :  { %2305 = sst [smem:[#allocation28_spill]] %s2293_s6 }
   0x6   :  { %15 = vsyncpa [#allocation3], 0 }
   0x7   :  { %17 = vsyncpa [#allocation3 + $0x1], 0 }
   0x8   :  { %18 = vsyncpa [#allocation6], 0 }
   0x9   :  { %20 = vsyncpa [#allocation6 + $0x1], 0 }
   0xa   :  { %21 = vsyncpa [#allocation9], 0 }
   0xb   :  { %22 = vsyncpa [#allocation12], 0 }
   0xc   :  { %23 = vsyncpa [#allocation4], 0 }
   0xd   :  { %25 = vsyncpa [#allocation4 + $0x1], 0 }
   0xe   :  { %26 = vsyncpa [#allocation15], 0 }
   0xf   :  { %28 = vsyncpa [#allocation15 + $0x1], 0  ;;  %s1804_s30 = smov 0   ;;  %s1806_s10 = smov 0  }
  0x10   :  { %s1808_s11 = smov 0   ;;  %s1810_s12 = smov 0  }
  0x11 LB: > { %s1740_s13 = smov [#allocation7]   ;;  %s1825_s15 = sadd.s32 4294967295, %s1738_s12   ;;  %s1738_s12 = sphi %s1810_s12, %s2335_s12   ;;  %s1734_s11 = sphi %s1808_s11, %s2334_s11   ;;  %s1730_s10 = sphi %s1806_s10, %s2333_s10   ;;  %s1726_s30 = sphi %s1804_s30, %s2332_s30  }
  0x12   : > { %s281_s14 = sshll.u32 %s1740_s13, 4  ;;  %p1228_p0 = scmp.ge.s32.totalorder %s1738_s12, 1  ;;  %s282_s14 = int_to_ptr.vmem [resolvable:$true] %s281_s14 }
  0x13   : > { %p2297_p1 = scmp.eq.s32.totalorder %s1825_s15, 0  ;;  %p269_p2 = scmp.lt.s32.totalorder %s1738_s12, 3 }
  0x14   : > { %s1741_s17 = smov [#allocation8]   ;;  %s1742_s20 = smov [#allocation10]  }
  0x15   : > { %p1830_p3 = pnand %p1228_p0, %p269_p2  ;;  %s294_s18 = sshll.u32 %s1741_s17, 4  ;;  %s1843_s18 = int_to_ptr.vmem [resolvable:$true] %s294_s18 }
  0x16   : > { %s1845_s21 = sshll.u32 %s1742_s20, 4  ;;  %s1479_s22 = scalar_lea.vmem %s282_s14, 4096  ;;  %s308_s21 = int_to_ptr.vmem [resolvable:$true] %s1845_s21 }
  0x17   : > { %s2306_s16 = scalar_select %p1830_p3, 1, 0 }
  0x18   : > { %p1383_p5 = pneg %p1830_p3  ;;  %p1480_p8 = scmp.ne.s32.totalorder %s282_s14, %s1479_s22 }
  0x19   : > { %p1487_p11 = scmp.lt.s32.totalorder %s282_s14, %s282_s14  ;;  %p1488_p12 = scmp.lt.s32.totalorder %s1479_s22, %s1479_s22 }
  0x1a   : > { %p1839_p6 = pnand %p1383_p5, %p2297_p1 }
  0x1b   : > { %p1489_p13 = por %p1488_p12, %p1487_p11 }
  0x1c   : > { %p1470_p7 = pneg %p1839_p6 }
  0x1e   : > { %p1482_p9 = pnand %p1480_p8, %p1470_p7 }
  0x20   : > { %p1483_p10 = pneg %p1482_p9 }
  0x22   : > { %p1490_p0 = pnand %p1489_p13, %p1483_p10 }
  0x24   : > { %1493 = shalt.err (!%p1490_p0)
}
  0x25   : > { %s1743_s23 = smov 256   ;;  %s1744_s24 = smov 16  }
  0x26   : > { %s2308_s2 = sld [smem:[#allocation25_spill]]  ;;  %s1505_s27 = scalar_lea.vmem %s1843_s18, 2048 }
  0x27   : > { %p1506_p2 = scmp.ne.s32.totalorder %s1843_s18, %s1505_s27  ;;  %p1513_p9 = scmp.lt.s32.totalorder %s1843_s18, %s1843_s18 }
  0x28   : > { %p1514_p10 = scmp.lt.s32.totalorder %s1505_s27, %s1505_s27 }
  0x29   : > { %p1508_p5 = pnand %p1506_p2, %p1470_p7 }
  0x2a   : > { %p1515_p11 = por %p1514_p10, %p1513_p9 }
  0x2b   : > { %p1509_p8 = pneg %p1508_p5 }
  0x2c   : > { %1386 = dma.hbm_to_vmem [thread:$0]  (!%p1839_p6), %s2308_s2, 4096, %s282_s14, [#allocation6], %s1743_s23, %s1743_s23, %s1744_s24  }
  0x2d   : > { %p1516_p12 = pnand %p1515_p11, %p1509_p8 }
  0x2f   : > { %1519 = shalt.err (!%p1516_p12)
}
  0x30   : > { %s1745_s28 = smov 128   ;;  %s1746_s29 = smov 8  }
  0x31   : > { %s2309_s3 = sld [smem:[#allocation26_spill]]  ;;  %s1531_s17 = scalar_lea.vmem %s308_s21, 2048 }
  0x32   : > { %p1532_p13 = scmp.ne.s32.totalorder %s308_s21, %s1531_s17  ;;  %p1539_p5 = scmp.lt.s32.totalorder %s308_s21, %s308_s21 }
  0x33   : > { %p1540_p8 = scmp.lt.s32.totalorder %s1531_s17, %s1531_s17 }
  0x34   : > { %p1534_p0 = pnand %p1532_p13, %p1470_p7 }
  0x35   : > { %p1541_p9 = por %p1540_p8, %p1539_p5 }
  0x36   : > { %p1535_p2 = pneg %p1534_p0 }
  0x37   : > { %1389 = dma.hbm_to_vmem [thread:$0]  (!%p1839_p6), %s2309_s3, 2048, %s1843_s18, [#allocation9], %s1745_s28, %s1745_s28, %s1746_s29  }
  0x38   : > { %p1542_p10 = pnand %p1541_p9, %p1535_p2 }
  0x3a   : > { %1545 = shalt.err (!%p1542_p10)
}
  0x3b   : > { %s2310_s4 = sld [smem:[#allocation27_spill]]  ;;  %s1747_s18 = smov [#allocation11]  }
  0x3c   : > { %s323_s25 = sshll.u32 %s1747_s18, 4  ;;  %s324_s25 = int_to_ptr.vmem [resolvable:$true] %s323_s25 }
  0x3d   : > { %s1557_s26 = scalar_lea.vmem %s324_s25, 4096  ;;  %p1565_p0 = scmp.lt.s32.totalorder %s324_s25, %s324_s25 }
  0x3e   : > { %p1558_p11 = scmp.ne.s32.totalorder %s324_s25, %s1557_s26  ;;  %p1566_p5 = scmp.lt.s32.totalorder %s1557_s26, %s1557_s26 }
  0x40   : > { %p1560_p12 = pnand %p1558_p11, %p1470_p7  ;;  %p1567_p2 = por %p1566_p5, %p1565_p0 }
  0x41   : > { %1392 = dma.hbm_to_vmem [thread:$0]  (!%p1839_p6), %s2310_s4, 2048, %s308_s21, [#allocation9], %s1745_s28, %s1745_s28, %s1746_s29  }
  0x42   : > { %p1561_p13 = pneg %p1560_p12 }
  0x44   : > { %p1568_p8 = pnand %p1567_p2, %p1561_p13 }
  0x46   : > { %1571 = shalt.err (!%p1568_p8)
}
  0x47   : > { %s2311_s6 = sld [smem:[#allocation28_spill]]  ;;  %s1227_s19 = sadd.s32 4294967294, %s1738_s12  }
  0x48   : > { %s1895_s28 = sadd.s32 1, %s1738_s12   ;;  %s41_s13 = sadd.s32 1, %s1734_s11 }
  0x49   : > { %s38_s29 = ssub.s32 %s1738_s12, %s1895_s28  ;;  %p48_p9 = scmp.ne.s32.totalorder %s1734_s11, %s1730_s10 }
  0x4a   : > { %p39_p7 = scmp.eq.s32.totalorder %s38_s29, 0  ;;  %p49_p10 = scmp.eq.s32.totalorder %s1738_s12, 0 }
  0x4b   : > { %p54_p11 = scmp.ne.s32.totalorder %s1730_s10, %s1726_s30  ;;  %p230_p13 = scmp.eq.s32.totalorder %s1825_s15, 1 }
  0x4c   : > { %s1906_s14 = scalar_select %p39_p7, %s1734_s11, %s41_s13  }
  0x4d   : > { %1395 = dma.hbm_to_vmem [thread:$0]  (!%p1839_p6), %s2311_s6, 4096, %s324_s25, [#allocation12], %s1743_s23, %s1743_s23, %s1744_s24  }
  0x4e   : > { %2312 = sst [smem:[#allocation23_spill]] %s1906_s14  ;;  %p1908_p12 = por %p49_p10, %p48_p9 }
  0x4f   : > { %p1914_p6 = por %p2297_p1, %p54_p11  ;;  %p236_p0 = scmp.eq.s32.totalorder %s1227_s19, 1 }
  0x50   : > { %p1414_p5 = scmp.lt.s32.totalorder %s1738_s12, 2  ;;  %s1921_s24 = sand.u32 1, %s1734_s11  }
  0x51   : > { %s2314_s23 = scalar_select %p1914_p6, 1, 0 }
  0x52   : > { %p1923_p2 = por %p230_p13, %p48_p9  ;;  %p1927_p8 = por %p236_p0, %p54_p11 }
  0x53   : > { %s1234_s18 = sshll.u32 %s1921_s24, 3  ;;  %s1235_s25 = sshll.u32 %s1738_s12, 7 }
  0x54   : > { %s2315_s20 = scalar_select %p1923_p2, 1, 0 }
  0x55   : > { %s2316_s22 = scalar_select %p1927_p8, 1, 0 }
  0x56   : > { %s2317_s0 = sld [smem:[#allocation24_spill]]  ;;  %s344_s19 = scalar_lea.vmem [#allocation2], %s1234_s18 }
  0x57   : > { %s351_s29 = sshll.u32 %s344_s19, 4  ;;  %p1942_p7 = pnand %p1414_p5, %p1908_p12  ;;  %s1938_s29 = int_to_ptr.vmem [resolvable:$true] %s351_s29 }
  0x58   : > { %s1355_s3 = smul.u32 24, %s1921_s24  ;;  %s341_s4 = scalar_lea.sflag [#allocation3], %s1921_s24 }
  0x59   : > { %p1574_p10 = pneg %p1942_p7 }
  0x5c   : > { %s1936_s27 = scalar_lea.hbm %s2317_s0, %s1235_s25  ;;  %s1577_s17 = scalar_lea.hbm %s2317_s0, 256 }
  0x5d   : > { %s1572_s26 = scalar_lea.hbm %s1936_s27, 128  ;;  %p1578_p12 = scmp.lt.s32.totalorder %s1936_s27, %s2317_s0 }
  0x5e   : > { %p1573_p9 = scmp.ne.s32.totalorder %s1936_s27, %s1572_s26  ;;  %p1579_p0 = scmp.lt.s32.totalorder %s1577_s17, %s1572_s26 }
  0x60   : > { %p1575_p11 = pnand %p1574_p10, %p1573_p9  ;;  %p1580_p5 = por %p1579_p0, %p1578_p12 }
  0x62   : > { %p1576_p13 = pneg %p1575_p11 }
  0x64   : > { %p1581_p4 = pnand %p1580_p5, %p1576_p13 }
  0x66   : > { %1584 = shalt.err (!%p1581_p4)
}
  0x67   : > { %s1585_s24 = scalar_lea.vmem %s1938_s29, 128  ;;  %s1748_s18 = smov [#allocation2]  }
  0x68   : > { %p1586_p1 = scmp.ne.s32.totalorder %s1938_s29, %s1585_s24  ;;  %s1590_s25 = sshll.u32 %s1748_s18, 4  ;;  %s1591_s25 = int_to_ptr.vmem [resolvable:$false] %s1590_s25 }
  0x69   : > { %s1592_s2 = scalar_lea.vmem %s1591_s25, 256  ;;  %p1593_p8 = scmp.lt.s32.totalorder %s1938_s29, %s1591_s25 }
  0x6a   : > { %p1588_p9 = pnand %p1586_p1, %p1574_p10  ;;  %p1594_p2 = scmp.lt.s32.totalorder %s1592_s2, %s1585_s24 }
  0x6c   : > { %p1589_p11 = pneg %p1588_p9  ;;  %p1595_p6 = por %p1594_p2, %p1593_p8 }
  0x6e   : > { %p1596_p12 = pnand %p1595_p6, %p1589_p11 }
  0x70   : > { %1599 = shalt.err (!%p1596_p12)
}
  0x71   : > { %1399 = dma.hbm_to_vmem [thread:$0]  (!%p1942_p7), %s1936_s27, 128, %s1938_s29, %s341_s4  }
  0x72   : > { %s1356_s26 = smul.u32 384, %s1738_s12  ;;  %s362_s17 = scalar_lea.vmem [#allocation5], %s1355_s3 }
  0x73   : > { %s370_s21 = sshll.u32 %s362_s17, 4  ;;  %s2319_s2 = sand.u32 1, %s1738_s12   ;;  %s371_s21 = int_to_ptr.vmem [resolvable:$true] %s370_s21 }
  0x74   : > { %s368_s0 = scalar_lea.hbm %s2288_s1, %s1356_s26  ;;  %s359_s24 = scalar_lea.sflag [#allocation6], %s2319_s2 }
  0x75   : > { %s1600_s25 = scalar_lea.hbm %s368_s0, 384  ;;  %s1605_s4 = scalar_lea.hbm %s2288_s1, 768 }
  0x76   : > { %p1601_p1 = scmp.ne.s32.totalorder %s368_s0, %s1600_s25  ;;  %p1606_p2 = scmp.lt.s32.totalorder %s368_s0, %s2288_s1 }
  0x77   : > { %p1607_p8 = scmp.lt.s32.totalorder %s1605_s4, %s1600_s25 }
  0x78   : > { %p1603_p4 = pnand %p1601_p1, %p1574_p10 }
  0x79   : > { %p1608_p13 = por %p1607_p8, %p1606_p2 }
  0x7a   : > { %p1604_p6 = pneg %p1603_p4 }
  0x7c   : > { %p1609_p0 = pnand %p1608_p13, %p1604_p6 }
  0x7e   : > { %1612 = shalt.err (!%p1609_p0)
}
  0x7f   : > { %s1613_s29 = scalar_lea.vmem %s371_s21, 384  ;;  %s1749_s26 = smov [#allocation5]  }
  0x80   : > { %p1614_p5 = scmp.ne.s32.totalorder %s371_s21, %s1613_s29  ;;  %s1618_s17 = sshll.u32 %s1749_s26, 4  ;;  %s1619_s17 = int_to_ptr.vmem [resolvable:$false] %s1618_s17 }
  0x81   : > { %s1620_s6 = scalar_lea.vmem %s1619_s17, 768  ;;  %p1621_p12 = scmp.lt.s32.totalorder %s371_s21, %s1619_s17 }
  0x82   : > { %p1616_p9 = pnand %p1614_p5, %p1574_p10  ;;  %p1622_p1 = scmp.lt.s32.totalorder %s1620_s6, %s1613_s29 }
  0x84   : > { %p1617_p11 = pneg %p1616_p9  ;;  %p1623_p4 = por %p1622_p1, %p1621_p12 }
  0x86   : > { %p1624_p3 = pnand %p1623_p4, %p1617_p11 }
  0x88   : > { %1627 = shalt.err (!%p1624_p3)
}
  0x89   : > { %1402 = dma.hbm_to_vmem [thread:$0]  (!%p1942_p7), %s368_s0, 384, %s371_s21, %s359_s24  }
  0x8a   : > { %p2320_p6 = scmp.ne.s32.totalorder %s2306_s16, 0 }
  0x8b   : > { %s1996_s14 = sand.u32 (!%p2320_p6), 1, %s1730_s10   ;;  %p2321_p10 = scmp.ne.s32.totalorder (!%p2320_p6), %s2314_s23, 0 }
  0x8c   : > { %379 = sbr.rel (%p2320_p6) target bundleno = 901 (0x385), region = 52  ;;  %s1238_s19 = sshll.u32 (!%p2320_p6), %s1996_s14, 3 }
  0x8d   : > { %s382_s18 = scalar_lea.sflag (!%p2320_p6), [#allocation3], %s1996_s14  ;;  %s2002_s2 = scalar_lea.vmem (!%p2320_p6), [#allocation2], %s1238_s19 }
  0x91   : > { %1697 = dma.done.wait (%p2321_p10), %s382_s18, 128  }
  0x92   : > { %1699 = vsyncadd (%p2321_p10), %s382_s18, 4294967168  ;;  %s390_s0 = sand.u32 1, %s1825_s15   ;;  %s1357_s16 = smul.u32 24, %s1996_s14 }
  0x93   : > { %s391_s13 = scalar_lea.sflag [#allocation6], %s390_s0 }
  0x94   : > { %s2012_s21 = scalar_lea.vmem [#allocation5], %s1357_s16 }
  0x95   : > { %1701 = dma.done.wait (%p2321_p10), %s391_s13, 384  }
  0x96   : > { %1703 = vsyncadd (%p2321_p10), %s391_s13, 4294966912  ;;  %p2322_p3 = scmp.eq.s32.totalorder %s1825_s15, 0 }
  0x98   : > { %1705 = dma.done.wait (%p2322_p3), [#allocation6], 4096   ;;  %p2323_p7 = pmov %p2322_p3 }
  0x99   : > { %p2324_p2 = pmov %p2322_p3 }
  0x9a   : > { %1707 = vsyncadd (%p2323_p7), [#allocation6], 4294963200 }
  0x9b   : > { %1709 = dma.done.wait (%p2324_p2), [#allocation9], 4096   ;;  %p2325_p8 = pmov %p2324_p2 }
  0x9c   : > { %p2326_p13 = pmov %p2324_p2 }
  0x9d   : > { %1711 = vsyncadd (%p2325_p8), [#allocation9], 4294963200 }
  0x9e   : > { %1713 = dma.done.wait (%p2326_p13), [#allocation12], 4096   ;;  %p2327_p0 = pmov %p2324_p2 }
  0x9f   : > { %v1750_v0 = vmov 0.0   ;;  %v2032_v1 = vld [vmem:[#allocation7 + $0xf8] sm:$0xff]  ;;  %v2034_v2 = vld [vmem:[#allocation7 + $0xf0] sm:$0xff]  ;;  %v2036_v3 = vld [vmem:[#allocation7 + $0xe8] sm:$0xff]  ;;  %vm1751_vm0 = vmmov 0   ;;  %s1247_s27 = sshll.u32 %s1825_s15, 7 }
  0xa0   : > { %1715 = vsyncadd (%p2327_p0), [#allocation12], 4294963200  ;;  %553 = vmatprep.mubr.f32.mxu0 %v1750_v0  ;;  %627 = vmatprep.mubr.f32.mxu1 %v1750_v0  ;;  %v2040_v4 = vld [vmem:[#allocation7 + $0xe0] sm:$0xff]  ;;  %v2044_v5 = vld [vmem:[#allocation7 + $0xd8] sm:$0xff]  ;;  %s447_s3 = scalar_lea.vmem [#allocation13], %s1238_s19  ;;  %s1358_s26 = smul.u32 384, %s1825_s15 }
  0xa1   : > { %489 = vmatprep.subr.mxu0 %v2032_v1  ;;  %563 = vmatprep.subr.mxu1 %v2032_v1  ;;  %v2048_v6 = vld [vmem:[#allocation7 + $0xd0] sm:$0xff]  ;;  %v2052_v7 = vld [vmem:[#allocation7 + $0xc8] sm:$0xff]  ;;  %v2056_v8 = vld [vmem:[#allocation7 + $0xc0] sm:$0xff]  ;;  %s1050_s29 = sshll.u32 %s447_s3, 4  ;;  %s2202_s18 = scalar_lea.hbm %s2295_s8, %s1247_s27  ;;  %s2204_s29 = int_to_ptr.vmem [resolvable:$true] %s1050_s29 }
  0xa2   : > { %490 = vmatpush1.msra.mxu0 %v2034_v2  ;;  %564 = vmatpush1.msra.mxu1 %v2034_v2  ;;  %v2060_v9 = vld [vmem:[#allocation7 + $0xb8] sm:$0xff]  ;;  %v2064_v10 = vld [vmem:[#allocation7 + $0xb0] sm:$0xff]  ;;  %v2068_v11 = vld [vmem:[#allocation7 + $0xa8] sm:$0xff]  ;;  %s1032_s0 = scalar_lea.sflag [#allocation4], %s1996_s14  ;;  %s1628_s13 = scalar_lea.vmem %s2204_s29, 128 }
  0xa3   : > { %491 = vmatprep.subr.mxu0 %v2036_v3  ;;  %565 = vmatprep.subr.mxu1 %v2036_v3  ;;  %v2072_v12 = vld [vmem:[#allocation7 + $0xa0] sm:$0xff]  ;;  %v2076_v13 = vld [vmem:[#allocation7 + $0x98] sm:$0xff]  ;;  %v2080_v14 = vld [vmem:[#allocation7 + $0x90] sm:$0xff]  ;;  %p1629_p5 = scmp.ne.s32.totalorder %s2204_s29, %s1628_s13  ;;  %p2328_p9 = scmp.ne.s32.totalorder %s2315_s20, 0 }
  0xa4   : > { %492 = vmatpush1.msra.mxu0 %v2040_v4  ;;  %566 = vmatpush1.msra.mxu1 %v2040_v4  ;;  %v2084_v15 = vld [vmem:[#allocation7 + $0x88] sm:$0xff]  ;;  %v2088_v16 = vld [vmem:[#allocation7 + $0x80] sm:$0xff]  ;;  %v2092_v17 = vld [vmem:[#allocation7 + $0x78] sm:$0xff] }
  0xa5   : > { %493 = vmatprep.subr.mxu0 %v2044_v5  ;;  %567 = vmatprep.subr.mxu1 %v2044_v5  ;;  %v2096_v18 = vld [vmem:[#allocation7 + $0x70] sm:$0xff]  ;;  %v2100_v19 = vld [vmem:[#allocation7 + $0x68] sm:$0xff]  ;;  %v2104_v20 = vld [vmem:[#allocation7 + $0x60] sm:$0xff]  ;;  %p1630_p11 = pnand %p1629_p5, %p2328_p9 }
  0xa6   : > { %494 = vmatpush1.msra.mxu0 %v2048_v6  ;;  %568 = vmatpush1.msra.mxu1 %v2048_v6  ;;  %v2108_v21 = vld [vmem:[#allocation7 + $0x58] sm:$0xff]  ;;  %v2112_v22 = vld [vmem:[#allocation7 + $0x50] sm:$0xff]  ;;  %v465_v23 = vld [vmem:[#allocation7 + $0x48] sm:$0xff] }
  0xa7   : > { %495 = vmatprep.subr.mxu0 %v2052_v7  ;;  %569 = vmatprep.subr.mxu1 %v2052_v7  ;;  %v464_v24 = vld [vmem:[#allocation7 + $0x40] sm:$0xff]  ;;  %v463_v25 = vld [vmem:[#allocation7 + $0x38] sm:$0xff]  ;;  %v462_v26 = vld [vmem:[#allocation7 + $0x30] sm:$0xff]  ;;  %p1631_p12 = pneg %p1630_p11 }
  0xa8   : > { %496 = vmatpush1.msra.mxu0 %v2056_v8  ;;  %570 = vmatpush1.msra.mxu1 %v2056_v8  ;;  %v461_v27 = vld [vmem:[#allocation7 + $0x28] sm:$0xff]  ;;  %v460_v28 = vld [vmem:[#allocation7 + $0x20] sm:$0xff]  ;;  %v459_v29 = vld [vmem:[#allocation7 + $0x18] sm:$0xff] }
  0xa9   : > { %497 = vmatprep.subr.mxu0 %v2060_v9  ;;  %571 = vmatprep.subr.mxu1 %v2060_v9  ;;  %v458_v30 = vld [vmem:[#allocation7 + $0x10] sm:$0xff]  ;;  %v457_v31 = vld [vmem:[#allocation7 + $0x8] sm:$0xff]  ;;  %v456_v32 = vld [vmem:[#allocation7] sm:$0xff] }
  0xaa   : > { %498 = vmatpush1.msra.mxu0 %v2064_v10  ;;  %572 = vmatpush1.msra.mxu1 %v2064_v10  ;;  %v488_v33 = vld [vmem:[%s2012_s21] sm:$0xff]  ;;  %v562_v34 = vld [vmem:[%s2012_s21 + $0x8] sm:$0xff]  ;;  %v637_v35 = vld [vmem:[%s2012_s21 + $0x10] sm:$0xff]  ;;  %s1752_s21 = smov [#allocation13]  }
  0xab   : > { %499 = vmatprep.subr.mxu0 %v2068_v11  ;;  %573 = vmatprep.subr.mxu1 %v2068_v11  ;;  %v734_v36 = vld [vmem:[#allocation8 + $0x78] sm:$0xff]  ;;  %v733_v38 = vld [vmem:[#allocation8 + $0x70] sm:$0xff]  ;;  %v732_v40 = vld [vmem:[#allocation8 + $0x68] sm:$0xff]  ;;  %s1632_s23 = sshll.u32 %s1752_s21, 4  ;;  %s1633_s23 = int_to_ptr.vmem [resolvable:$false] %s1632_s23 }
  0xac   : > { %500 = vmatpush1.msra.mxu0 %v2072_v12  ;;  %574 = vmatpush1.msra.mxu1 %v2072_v12  ;;  %v750_v37 = vld [vmem:[#allocation10 + $0x78] sm:$0xff]  ;;  %v749_v39 = vld [vmem:[#allocation10 + $0x70] sm:$0xff]  ;;  %v748_v41 = vld [vmem:[#allocation10 + $0x68] sm:$0xff]  ;;  %s1634_s24 = scalar_lea.vmem %s1633_s23, 256  ;;  %p1635_p1 = scmp.lt.s32.totalorder %s2204_s29, %s1633_s23 }
  0xad   : > { %501 = vmatprep.subr.mxu0 %v2076_v13  ;;  %575 = vmatprep.subr.mxu1 %v2076_v13  ;;  %v731_v42 = vld [vmem:[#allocation8 + $0x60] sm:$0xff]  ;;  %v730_v44 = vld [vmem:[#allocation8 + $0x58] sm:$0xff]  ;;  %v729_v46 = vld [vmem:[#allocation8 + $0x50] sm:$0xff]  ;;  %p1636_p4 = scmp.lt.s32.totalorder %s1634_s24, %s1628_s13 }
  0xae   : > { %502 = vmatpush1.msra.mxu0 %v2080_v14  ;;  %576 = vmatpush1.msra.mxu1 %v2080_v14  ;;  %v747_v43 = vld [vmem:[#allocation10 + $0x60] sm:$0xff]  ;;  %v746_v45 = vld [vmem:[#allocation10 + $0x58] sm:$0xff]  ;;  %v745_v47 = vld [vmem:[#allocation10 + $0x50] sm:$0xff] }
  0xaf   : > { %503 = vmatprep.subr.mxu0 %v2084_v15  ;;  %577 = vmatprep.subr.mxu1 %v2084_v15  ;;  %v728_v48 = vld [vmem:[#allocation8 + $0x48] sm:$0xff]  ;;  %v727_v50 = vld [vmem:[#allocation8 + $0x40] sm:$0xff]  ;;  %v726_v52 = vld [vmem:[#allocation8 + $0x38] sm:$0xff]  ;;  %p1637_p6 = por %p1636_p4, %p1635_p1 }
  0xb0   : > { %504 = vmatpush1.msra.mxu0 %v2088_v16  ;;  %578 = vmatpush1.msra.mxu1 %v2088_v16  ;;  %v744_v49 = vld [vmem:[#allocation10 + $0x48] sm:$0xff]  ;;  %v743_v51 = vld [vmem:[#allocation10 + $0x40] sm:$0xff]  ;;  %v742_v53 = vld [vmem:[#allocation10 + $0x38] sm:$0xff] }
  0xb1   : > { %505 = vmatprep.subr.mxu0 %v2092_v17  ;;  %579 = vmatprep.subr.mxu1 %v2092_v17  ;;  %v725_v54 = vld [vmem:[#allocation8 + $0x30] sm:$0xff]  ;;  %v724_v56 = vld [vmem:[#allocation8 + $0x28] sm:$0xff]  ;;  %v723_v58 = vld [vmem:[#allocation8 + $0x20] sm:$0xff]  ;;  %p1638_p10 = pnand %p1637_p6, %p1631_p12 }
  0xb2   : > { %506 = vmatpush1.msra.mxu0 %v2096_v18  ;;  %580 = vmatpush1.msra.mxu1 %v2096_v18  ;;  %v741_v55 = vld [vmem:[#allocation10 + $0x30] sm:$0xff]  ;;  %v740_v57 = vld [vmem:[#allocation10 + $0x28] sm:$0xff]  ;;  %v739_v59 = vld [vmem:[#allocation10 + $0x20] sm:$0xff] }
  0xb3   : > { %507 = vmatprep.subr.mxu0 %v2100_v19  ;;  %581 = vmatprep.subr.mxu1 %v2100_v19  ;;  %v722_v60 = vld [vmem:[#allocation8 + $0x18] sm:$0xff]  ;;  %v721_v62 = vld [vmem:[#allocation8 + $0x10] sm:$0xff] }
  0xb4   : > { %508 = vmatpush1.msra.mxu0 %v2104_v20  ;;  %582 = vmatpush1.msra.mxu1 %v2104_v20  ;;  %v738_v61 = vld [vmem:[#allocation10 + $0x18] sm:$0xff]  ;;  %v737_v63 = vld [vmem:[#allocation10 + $0x10] sm:$0xff] }
  0xb5   : > { %509 = vmatprep.subr.mxu0 %v2108_v21  ;;  %583 = vmatprep.subr.mxu1 %v2108_v21 }
  0xb6   : > { %510 = vmatpush1.msra.mxu0 %v2112_v22  ;;  %584 = vmatpush1.msra.mxu1 %v2112_v22 }
  0xb7   : > { %511 = vmatprep.subr.mxu0 %v465_v23  ;;  %585 = vmatprep.subr.mxu1 %v465_v23 }
  0xb8   : > { %512 = vmatpush1.msra.mxu0 %v464_v24  ;;  %586 = vmatpush1.msra.mxu1 %v464_v24 }
  0xb9   : > { %513 = vmatprep.subr.mxu0 %v463_v25  ;;  %587 = vmatprep.subr.mxu1 %v463_v25 }
  0xba   : > { %514 = vmatpush1.msra.mxu0 %v462_v26  ;;  %588 = vmatpush1.msra.mxu1 %v462_v26 }
  0xbb   : > { %515 = vmatprep.subr.mxu0 %v461_v27  ;;  %589 = vmatprep.subr.mxu1 %v461_v27 }
  0xbc   : > { %516 = vmatpush1.msra.mxu0 %v460_v28  ;;  %590 = vmatpush1.msra.mxu1 %v460_v28 }
  0xbd   : > { %517 = vmatprep.subr.mxu0 %v459_v29  ;;  %591 = vmatprep.subr.mxu1 %v459_v29 }
  0xbe   : > { %518 = vmatpush1.msra.mxu0 %v458_v30  ;;  %592 = vmatpush1.msra.mxu1 %v458_v30 }
  0xbf   : > { %519 = vmatprep.subr.mxu0 %v457_v31  ;;  %593 = vmatprep.subr.mxu1 %v457_v31 }
  0xc0   : > { %520 = vmatpush1.msra.mxu0 %v456_v32  ;;  %594 = vmatpush1.msra.mxu1 %v456_v32 }
  0xc1   : > { %554 = vmatmul.mubr.f32.vlgmr.msra.gmra.mxu0 %v488_v33  ;;  %638 = vmatprep.subr.mxu0 %v2032_v1  ;;  %v720_v1 = vld [vmem:[#allocation8 + $0x8] sm:$0xff]  ;;  %v926_v33 = vld [vmem:[#allocation11 + $0xa0] sm:$0xff] }
  0xc2   : > { %628 = vmatmul.mubr.f32.vlgmr.msra.gmra.mxu1 %v562_v34  ;;  %639 = vmatpush1.msra.mxu0 %v2034_v2  ;;  %v736_v2 = vld [vmem:[#allocation10 + $0x8] sm:$0xff]  ;;  %v925_v34 = vld [vmem:[#allocation11 + $0x98] sm:$0xff] }
  0xc3   : > { %640 = vmatprep.subr.mxu0 %v2036_v3  ;;  %702 = vmatprep.mubr.f32.mxu0 %v1750_v0  ;;  %v719_v3 = vld [vmem:[#allocation8] sm:$0xff] }
  0xc4   : > { %641 = vmatpush1.msra.mxu0 %v2040_v4  ;;  %1285 = vmatprep.subr.mxu1 %v1750_v0  ;;  %v455_v4 = vld [vmem:[%s2002_s2] sm:$0xff]  ;;  %s2208_s2 = scalar_lea.vmem [#allocation14], %s1357_s16 }
  0xc5   : > { %642 = vmatprep.subr.mxu0 %v2044_v5  ;;  %1286 = vmatpush3.msra.mxu1 %v750_v37  ;;  %v735_v5 = vld [vmem:[#allocation10] sm:$0xff]  ;;  %s1064_s19 = sshll.u32 %s2208_s2, 4  ;;  %s2243_s19 = int_to_ptr.vmem [resolvable:$true] %s1064_s19 }
  0xc6   : > { %643 = vmatpush1.msra.mxu0 %v2048_v6  ;;  %1287 = vmatprep.subr.mxu1 %v1750_v0  ;;  %v922_v37 = vld [vmem:[#allocation11 + $0x80] sm:$0xff] }
  0xc7   : > { %644 = vmatprep.subr.mxu0 %v2052_v7  ;;  %1288 = vmatpush3.msra.mxu1 %v749_v39  ;;  %v920_v39 = vld [vmem:[#allocation11 + $0x70] sm:$0xff] }
  0xc8   : > { %645 = vmatpush1.msra.mxu0 %v2056_v8  ;;  %1289 = vmatprep.subr.mxu1 %v1750_v0 }
  0xc9   : > { %646 = vmatprep.subr.mxu0 %v2060_v9  ;;  %1290 = vmatpush3.msra.mxu1 %v748_v41  ;;  %v918_v41 = vld [vmem:[#allocation11 + $0x60] sm:$0xff] }
  0xca   : > { %647 = vmatpush1.msra.mxu0 %v2064_v10  ;;  %1291 = vmatprep.subr.mxu1 %v1750_v0 }
  0xcb   : > { %648 = vmatprep.subr.mxu0 %v2068_v11  ;;  %1292 = vmatpush3.msra.mxu1 %v747_v43  ;;  %v916_v43 = vld [vmem:[#allocation11 + $0x50] sm:$0xff] }
  0xcc   : > { %649 = vmatpush1.msra.mxu0 %v2072_v12  ;;  %1293 = vmatprep.subr.mxu1 %v1750_v0 }
  0xcd   : > { %650 = vmatprep.subr.mxu0 %v2076_v13  ;;  %1294 = vmatpush3.msra.mxu1 %v746_v45  ;;  %v914_v45 = vld [vmem:[#allocation11 + $0x40] sm:$0xff] }
  0xce   : > { %651 = vmatpush1.msra.mxu0 %v2080_v14  ;;  %1295 = vmatprep.subr.mxu1 %v1750_v0 }
  0xcf   : > { %652 = vmatprep.subr.mxu0 %v2084_v15  ;;  %1296 = vmatpush3.msra.mxu1 %v745_v47  ;;  %v912_v47 = vld [vmem:[#allocation11 + $0x30] sm:$0xff] }
  0xd0   : > { %653 = vmatpush1.msra.mxu0 %v2088_v16  ;;  %1297 = vmatprep.subr.mxu1 %v1750_v0 }
  0xd1   : > { %654 = vmatprep.subr.mxu0 %v2092_v17  ;;  %1298 = vmatpush3.msra.mxu1 %v744_v49  ;;  %v910_v49 = vld [vmem:[#allocation11 + $0x20] sm:$0xff] }
  0xd2   : > { %655 = vmatpush1.msra.mxu0 %v2096_v18  ;;  %1299 = vmatprep.subr.mxu1 %v1750_v0 }
  0xd3   : > { %656 = vmatprep.subr.mxu0 %v2100_v19  ;;  %1300 = vmatpush3.msra.mxu1 %v743_v51  ;;  %v908_v51 = vld [vmem:[#allocation11 + $0x10] sm:$0xff] }
  0xd4   : > { %657 = vmatpush1.msra.mxu0 %v2104_v20  ;;  %1301 = vmatprep.subr.mxu1 %v1750_v0 }
  0xd5   : > { %658 = vmatprep.subr.mxu0 %v2108_v21  ;;  %1302 = vmatpush3.msra.mxu1 %v742_v53  ;;  %v906_v53 = vld [vmem:[#allocation11] sm:$0xff] }
  0xd6   : > { %659 = vmatpush1.msra.mxu0 %v2112_v22  ;;  %1303 = vmatprep.subr.mxu1 %v1750_v0 }
  0xd7   : > { %660 = vmatprep.subr.mxu0 %v465_v23  ;;  %1304 = vmatpush3.msra.mxu1 %v741_v55  ;;  %v937_v23 = vld [vmem:[#allocation11 + $0xf8] sm:$0xff] }
  0xd8   : > { %661 = vmatpush1.msra.mxu0 %v464_v24  ;;  %1305 = vmatprep.subr.mxu1 %v1750_v0  ;;  %v936_v24 = vld [vmem:[#allocation11 + $0xf0] sm:$0xff] }
  0xd9   : > { %662 = vmatprep.subr.mxu0 %v463_v25  ;;  %1306 = vmatpush3.msra.mxu1 %v740_v57  ;;  %v935_v25 = vld [vmem:[#allocation11 + $0xe8] sm:$0xff] }
  0xda   : > { %663 = vmatpush1.msra.mxu0 %v462_v26  ;;  %1307 = vmatprep.subr.mxu1 %v1750_v0  ;;  %v934_v26 = vld [vmem:[#allocation11 + $0xe0] sm:$0xff] }
  0xdb   : > { %664 = vmatprep.subr.mxu0 %v461_v27  ;;  %1308 = vmatpush3.msra.mxu1 %v739_v59  ;;  %v933_v27 = vld [vmem:[#allocation11 + $0xd8] sm:$0xff] }
  0xdc   : > { %665 = vmatpush1.msra.mxu0 %v460_v28  ;;  %1309 = vmatprep.subr.mxu1 %v1750_v0  ;;  %v932_v28 = vld [vmem:[#allocation11 + $0xd0] sm:$0xff] }
  0xdd   : > { %666 = vmatprep.subr.mxu0 %v459_v29  ;;  %1310 = vmatpush3.msra.mxu1 %v738_v61  ;;  %v931_v29 = vld [vmem:[#allocation11 + $0xc8] sm:$0xff] }
  0xde   : > { %667 = vmatpush1.msra.mxu0 %v458_v30  ;;  %1311 = vmatprep.subr.mxu1 %v1750_v0  ;;  %v929_v30 = vld [vmem:[#allocation11 + $0xb8] sm:$0xff] }
  0xdf   : > { %668 = vmatprep.subr.mxu0 %v457_v31  ;;  %1312 = vmatpush3.msra.mxu1 %v737_v63  ;;  %v928_v31 = vld [vmem:[#allocation11 + $0xb0] sm:$0xff] }
  0xe0   : > { %669 = vmatpush1.msra.mxu0 %v456_v32  ;;  %1313 = vmatprep.subr.mxu1 %v1750_v0  ;;  %v927_v32 = vld [vmem:[#allocation11 + $0xa8] sm:$0xff] }
  0xe1   : > { %703 = vmatmul.mubr.f32.vlgmr.msra.gmra.mxu0 %v637_v35  ;;  %1320 = vmatprep.subr.mxu0 %v1750_v0  ;;  %v924_v35 = vld [vmem:[#allocation11 + $0x90] sm:$0xff] }
  0xe2   : > { %1321 = vmatpush3.msra.mxu0 %v734_v36  ;;  %1314 = vmatpush3.msra.mxu1 %v736_v2  ;;  %v923_v36 = vld [vmem:[#allocation11 + $0x88] sm:$0xff]  ;;  %v940_v2 = vlaneseq }
  0xe3   : > { %1322 = vmatprep.subr.mxu0 %v1750_v0  ;;  %1352 = vmatprep.mubr.msk.f32.mxu0 %vm1751_vm0, %v1750_v0 }
  0xe4   : > { %1323 = vmatpush3.msra.mxu0 %v733_v38  ;;  %1315 = vmatprep.subr.mxu1 %v1750_v0  ;;  %v921_v38 = vld [vmem:[#allocation11 + $0x78] sm:$0xff] }
  0xe5   : > { %1324 = vmatprep.subr.mxu0 %v1750_v0  ;;  %1316 = vmatpush3.msra.mxu1 %v735_v5  ;;  %v938_v5 = vld [vmem:[%s2294_s7] sm:$0x3] }
  0xe6   : > { %1325 = vmatpush3.msra.mxu0 %v732_v40  ;;  %1317 = vmatprep.mubr.msk.f32.mxu1 %vm1751_vm0, %v1750_v0  ;;  %v919_v40 = vld [vmem:[#allocation11 + $0x68] sm:$0xff] }
  0xe7   : > { %1326 = vmatprep.subr.mxu0 %v1750_v0  ;;  %950 = vmatprep.subr.mxu1 %v937_v23 }
  0xe8   : > { %1327 = vmatpush3.msra.mxu0 %v731_v42  ;;  %v917_v42 = vld [vmem:[#allocation11 + $0x58] sm:$0xff] }
  0xe9   : > { %1328 = vmatprep.subr.mxu0 %v1750_v0 }
  0xea   : > { %1329 = vmatpush3.msra.mxu0 %v730_v44  ;;  %v915_v44 = vld [vmem:[#allocation11 + $0x48] sm:$0xff] }
  0xeb   : > { %1330 = vmatprep.subr.mxu0 %v1750_v0 }
  0xec   : > { %1331 = vmatpush3.msra.mxu0 %v729_v46  ;;  %v913_v46 = vld [vmem:[#allocation11 + $0x38] sm:$0xff] }
  0xed   : > { %1332 = vmatprep.subr.mxu0 %v1750_v0 }
  0xee   : > { %1333 = vmatpush3.msra.mxu0 %v728_v48  ;;  %v911_v48 = vld [vmem:[#allocation11 + $0x28] sm:$0xff] }
  0xef   : > { %1334 = vmatprep.subr.mxu0 %v1750_v0 }
  0xf0   : > { %1335 = vmatpush3.msra.mxu0 %v727_v50  ;;  %v909_v50 = vld [vmem:[#allocation11 + $0x18] sm:$0xff] }
  0xf1   : > { %1336 = vmatprep.subr.mxu0 %v1750_v0 }
  0xf2   : > { %1337 = vmatpush3.msra.mxu0 %v726_v52  ;;  %v907_v52 = vld [vmem:[#allocation11 + $0x8] sm:$0xff] }
  0xf3   : > { %1338 = vmatprep.subr.mxu0 %v1750_v0 }
  0xf4   : > { %1339 = vmatpush3.msra.mxu0 %v725_v54 }
  0xf5   : > { %1340 = vmatprep.subr.mxu0 %v1750_v0 }
  0xf6   : > { %1341 = vmatpush3.msra.mxu0 %v724_v56  ;;  %v1244_v56 = vld [vmem:[%s2292_s5] ss:$0 sm:$0xff] }
  0xf7   : > { %1342 = vmatprep.subr.mxu0 %v1750_v0 }
  0xf8   : > { %1343 = vmatpush3.msra.mxu0 %v723_v58 }
  0xf9   : > { %1344 = vmatprep.subr.mxu0 %v1750_v0 }
  0xfa   : > { %1345 = vmatpush3.msra.mxu0 %v722_v60 }
  0xfb   : > { %1346 = vmatprep.subr.mxu0 %v1750_v0 }
  0xfc   : > { %1347 = vmatpush3.msra.mxu0 %v721_v62 }
  0xfd   : > { %1348 = vmatprep.subr.mxu0 %v1750_v0 }
  0xfe   : > { %1349 = vmatpush3.msra.mxu0 %v720_v1 }
  0xff   : > { %1350 = vmatprep.subr.mxu0 %v1750_v0 }
 0x100   : > { %1351 = vmatpush3.msra.mxu0 %v719_v3  ;;  %v941_v3 = vshrl.u32 %v940_v2, 7 }
 0x101   : > { %1353 = vmatmul.mubr.f32.vlgmr.msra.gmra.mxu0 %v455_v4 }
 0x102   : > { %v942_v4 = vsub.s32 0, %v941_v3 }
 0x181   : > { %v555_v6 = vpop.f32.mrf.mxu0 }
 0x182   : > { %v629_v7 = vpop.f32.mrf.mxu1  ;;  %v560_v8 = vmul.f32 %v555_v6, %v555_v6  ;;  %v946_v6 = vsub.s32 1, %v941_v3 }
 0x183   : > { %v634_v9 = vmul.f32 %v629_v7, %v629_v7  ;;  %v2181_v10 = vpop.f32.mrf.mxu0  ;;  %v943_v7 = vrot.slane %v938_v5, %v942_v4 }
 0x184   : > { %v631_v54 = vpop.f32.mrf.mxu1 }
 0x185   : > { %v635_v12 = vadd.f32 %v634_v9, %v560_v8  ;;  %v947_v8 = vrot.slane %v938_v5, %v946_v6 }
 0x1a1   : > { %v704_v11 = vpop.f32.mrf.mxu0 }
 0x1a2   : > { %v709_v13 = vmul.f32 %v704_v11, %v704_v11 }
 0x1a3   : > { %v2184_v20 = vpop.f32.mrf.mxu0 }
 0x1a4   : > { %v710_v14 = vadd.f32 %v709_v13, %v635_v12 }
 0x1a6   : > { %1462 = vrsqrt.f32 %v710_v14  ;;  %vm714_vm1 = vcmp.eq.f32.partialorder %v710_v14, inf  ;;  %v717_v17 = vand.u32 2147483648, %v710_v14  ;;  %vm716_vm2 = vcmp.eq.f32.partialorder %v710_v14, 0.0 }
 0x1b3   : > { %v1463_v15 = vpop.eup %1462 }
 0x1b4   : > { %v713_v16 = vmul.f32 %v1463_v15, %v710_v14 }
 0x1b6   : > { %v715_v18 = vsel %vm714_vm1, %v710_v14, %v713_v16 }
 0x1b7   : > { %v718_v19 = vsel %vm716_vm2, %v717_v17, %v715_v18 }
 0x1b8   : > { %1318 = vmatmul.mubr.f32.vlgmr.msra.gmra.mxu1 %v718_v19 }
 0x1b9   : > { %1014 = vmatprep.mubr.f32.mxu1 %v1750_v0  ;;  %951 = vmatpush1.msra.mxu1 %v936_v24  ;;  %v930_v0 = vld [vmem:[#allocation11 + $0xc0] sm:$0xff] }
 0x1ba   : > { %952 = vmatprep.subr.mxu1 %v935_v25 }
 0x1bb   : > { %953 = vmatpush1.msra.mxu1 %v934_v26 }
 0x1bc   : > { %954 = vmatprep.subr.mxu1 %v933_v27 }
 0x1bd   : > { %955 = vmatpush1.msra.mxu1 %v932_v28 }
 0x1be   : > { %956 = vmatprep.subr.mxu1 %v931_v29 }
 0x1bf   : > { %957 = vmatpush1.msra.mxu1 %v930_v0 }
 0x1c0   : > { %958 = vmatprep.subr.mxu1 %v929_v30 }
 0x1c1   : > { %v2186_v21 = vpop.f32.mrf.mxu0  ;;  %959 = vmatpush1.msra.mxu1 %v928_v31 }
 0x1c2   : > { %960 = vmatprep.subr.mxu1 %v927_v32 }
 0x1c3   : > { %v1354_v22 = vpop.f32.mrf.mxu0  ;;  %961 = vmatpush1.msra.mxu1 %v926_v33 }
 0x1c4   : > { %962 = vmatprep.subr.mxu1 %v925_v34 }
 0x1c5   : > { %963 = vmatpush1.msra.mxu1 %v924_v35 }
 0x1c6   : > { %964 = vmatprep.subr.mxu1 %v923_v36 }
 0x1c7   : > { %965 = vmatpush1.msra.mxu1 %v922_v37 }
 0x1c8   : > { %966 = vmatprep.subr.mxu1 %v921_v38 }
 0x1c9   : > { %967 = vmatpush1.msra.mxu1 %v920_v39 }
 0x1ca   : > { %968 = vmatprep.subr.mxu1 %v919_v40 }
 0x1cb   : > { %969 = vmatpush1.msra.mxu1 %v918_v41 }
 0x1cc   : > { %970 = vmatprep.subr.mxu1 %v917_v42 }
 0x1cd   : > { %971 = vmatpush1.msra.mxu1 %v916_v43 }
 0x1ce   : > { %972 = vmatprep.subr.mxu1 %v915_v44 }
 0x1cf   : > { %973 = vmatpush1.msra.mxu1 %v914_v45 }
 0x1d0   : > { %974 = vmatprep.subr.mxu1 %v913_v46 }
 0x1d1   : > { %975 = vmatpush1.msra.mxu1 %v912_v47 }
 0x1d2   : > { %976 = vmatprep.subr.mxu1 %v911_v48 }
 0x1d3   : > { %977 = vmatpush1.msra.mxu1 %v910_v49 }
 0x1d4   : > { %978 = vmatprep.subr.mxu1 %v909_v50 }
 0x1d5   : > { %979 = vmatpush1.msra.mxu1 %v908_v51 }
 0x1d6   : > { %980 = vmatprep.subr.mxu1 %v907_v52 }
 0x1d7   : > { %981 = vmatpush1.msra.mxu1 %v906_v53 }
 0x278   : > { %v817_v55 = vpop.f32.mrf.mxu1 }
 0x279   : > { %v888_v57 = vadd.f32 %v2186_v21, %v817_v55 }
 0x27a   : > { %v1319_v58 = vpop.f32.mrf.mxu1 }
 0x27b   : > { %v898_v59 = vadd.f32 %v1244_v56, %v888_v57 }
 0x27d   : > { %v1245_v60 = vmul.f32 -1.442695, %v898_v59 }
 0x27f   : > { %1464 = vpow2.f32 %v1245_v60 }
 0x28c   : > { %v1465_v61 = vpop.eup %1464 }
 0x28d   : > { %v902_v62 = vadd.f32 1.0, %v1465_v61 }
 0x28f   : > { %1466 = vrcp.f32 %v902_v62 }
 0x29c   : > { %v1467_v63 = vpop.eup %1466 }
 0x29d   : > { %v905_v1 = vmul.f32 %v1467_v63, %v898_v59 }
 0x29f   : > { %1015 = vmatmul.mubr.f32.vlgmr.msra.gmra.mxu1 %v905_v1 }
 0x35f   : > { %v1016_v9 = vpop.f32.mrf.mxu1 }
 0x360   : > { %v1017_v11 = vadd.f32 %v1016_v9, %v943_v7 }
 0x361   : > { %v1018_v12 = vpop.f32.mrf.mxu1 }
 0x362   : > { %1021 = vst [vmem:[%s447_s3] sm:$0xff] %v1017_v11  ;;  %v1019_v13 = vadd.f32 %v1018_v12, %v947_v8 }
 0x363   : > { %1641 = shalt.err (!%p1638_p10)
}
 0x364   : > { %s1642_s16 = scalar_lea.hbm %s2202_s18, 128  ;;  %s1646_s27 = scalar_lea.hbm %s2295_s8, 256 }
 0x365   : > { %p1643_p3 = scmp.ne.s32.totalorder %s2202_s18, %s1642_s16  ;;  %p1647_p8 = scmp.lt.s32.totalorder %s2202_s18, %s2295_s8 }
 0x366   : > { %p1648_p13 = scmp.lt.s32.totalorder %s1646_s27, %s1642_s16 }
 0x367   : > { %p1644_p7 = pnand %p1643_p3, %p2328_p9 }
 0x368   : > { %p1649_p0 = por %p1648_p13, %p1647_p8 }
 0x369   : > { %p1645_p2 = pneg %p1644_p7 }
 0x36b   : > { %p1650_p5 = pnand %p1649_p0, %p1645_p2 }
 0x36d   : > { %1653 = shalt.err (!%p1650_p5)
}
 0x36e   : > { %1379 = dma.vmem_to_hbm [thread:$0]  (%p2328_p9), %s2204_s29, 128, %s2202_s18, %s1032_s0   ;;  %v1025_v14 = vmul.f32 %v1019_v13, %v2181_v10  ;;  %v1026_v15 = vmul.f32 %v1019_v13, %v631_v54  ;;  %v1027_v16 = vmul.f32 %v1019_v13, %v2184_v20 }
 0x36f   : > { %s2239_s21 = scalar_lea.hbm %s2296_s9, %s1358_s26  ;;  %s1037_s29 = scalar_lea.sflag [#allocation15], %s1996_s14 }
 0x370   : > { %1028 = vst [vmem:[%s2208_s2] sm:$0xff] %v1025_v14  ;;  %1029 = vst [vmem:[%s2208_s2 + $0x8] sm:$0xff] %v1026_v15  ;;  %s1654_s18 = scalar_lea.vmem %s2243_s19, 384  ;;  %s1753_s15 = smov [#allocation14]  }
 0x371   : > { %1030 = vst [vmem:[%s2208_s2 + $0x10] sm:$0xff] %v1027_v16  ;;  %p1655_p11 = scmp.ne.s32.totalorder %s2243_s19, %s1654_s18  ;;  %s1658_s0 = sshll.u32 %s1753_s15, 4  ;;  %s1659_s0 = int_to_ptr.vmem [resolvable:$false] %s1658_s0 }
 0x372   : > { %s1660_s26 = scalar_lea.vmem %s1659_s0, 768  ;;  %p1661_p4 = scmp.lt.s32.totalorder %s2243_s19, %s1659_s0 }
 0x373   : > { %p1656_p12 = pnand %p1655_p11, %p2328_p9  ;;  %p1662_p6 = scmp.lt.s32.totalorder %s1660_s26, %s1654_s18 }
 0x375   : > { %p1657_p1 = pneg %p1656_p12  ;;  %p1663_p10 = por %p1662_p6, %p1661_p4 }
 0x377   : > { %p1664_p3 = pnand %p1663_p10, %p1657_p1 }
 0x379   : > { %1667 = shalt.err (!%p1664_p3)
}
 0x37a   : > { %s1668_s2 = scalar_lea.hbm %s2239_s21, 384  ;;  %s1672_s24 = scalar_lea.hbm %s2296_s9, 768 }
 0x37b   : > { %p1669_p7 = scmp.ne.s32.totalorder %s2239_s21, %s1668_s2  ;;  %p1673_p13 = scmp.lt.s32.totalorder %s2239_s21, %s2296_s9 }
 0x37c   : > { %p1674_p0 = scmp.lt.s32.totalorder %s1672_s24, %s1668_s2 }
 0x37d   : > { %p1670_p2 = pnand %p1669_p7, %p2328_p9 }
 0x37e   : > { %p1675_p5 = por %p1674_p0, %p1673_p13 }
 0x37f   : > { %p1671_p8 = pneg %p1670_p2 }
 0x381   : > { %p1676_p11 = pnand %p1675_p5, %p1671_p8 }
 0x383   : > { %1679 = shalt.err (!%p1676_p11)
}
 0x384   : > { %1380 = dma.vmem_to_hbm [thread:$0]  (%p2328_p9), %s2243_s19, 384, %s2239_s21, %s1037_s29  }
 0x385 PF: > { %s1076_s4 = sand.u32 1, %s1726_s30   ;;  %p2329_p12 = scmp.ne.s32.totalorder %s2316_s22, 0 }
 0x386   : > { %p2330_p1 = scmp.ge.s32.totalorder %s1738_s12, 2  ;;  %s1077_s27 = scalar_lea.sflag [#allocation4], %s1076_s4 }
 0x388   : > { %p1404_p4 = pnand %p2330_p1, %p2329_p12 }
 0x38a   : > { %p1405_p6 = pneg %p1404_p4 }
 0x38c   : > { %1717 = dma.done.wait (%p1405_p6), %s1077_s27, 128  }
 0x38d   : > { %1719 = vsyncadd (%p1405_p6), %s1077_s27, 4294967168  ;;  %s1086_s3 = scalar_lea.sflag [#allocation15], %s1076_s4 }
 0x38e   : > { %1721 = dma.done.wait (%p1405_p6), %s1086_s3, 384  }
 0x38f   : > { %1723 = vsyncadd (%p1405_p6), %s1086_s3, 4294966912  ;;  %s2331_s20 = sld [smem:[#allocation23_spill]]  ;;  %p31_p9 = scmp.ge.s32.totalorder %s1895_s28, 4  }
 0x390   : > { %s2332_s30 = smov %s1730_s10  ;;  %s2333_s10 = smov %s1734_s11 }
 0x391   : > { %s2335_s12 = smov %s1895_s28  ;;  %33 = sbr.rel (!%p31_p9) target bundleno = 17 (0x11), region = 143 }
 0x395   : > { %s2334_s11 = smov %s2331_s20 }
 0x396   :  { %1091 = vsyncpa [#allocation3], 1 }
 0x397   :  { %1093 = vsyncpa [#allocation3 + $0x1], 1 }
 0x398   :  { %1094 = vsyncpa [#allocation6], 1 }
 0x399   :  { %1096 = vsyncpa [#allocation6 + $0x1], 1 }
 0x39a   :  { %1097 = vsyncpa [#allocation9], 1 }
 0x39b   :  { %1098 = vsyncpa [#allocation12], 1 }
 0x39c   :  { %1099 = vsyncpa [#allocation4], 1 }
 0x39d   :  { %1101 = vsyncpa [#allocation4 + $0x1], 1 }
 0x39e   :  { %1102 = vsyncpa [#allocation15], 1 }
 0x39f   :  { %1104 = vsyncpa [#allocation15 + $0x1], 1 }

</bundles_post_ra>
